<compile_context>
chip_gen: v7x
topology: tpu7x:2x2x1
jax: 0.10.0
libtpu: 0.0.40
codegen_flags: <defaults>
</compile_context>

<pallas_src>
import jax
import jax.numpy as jnp
from jax import lax
from jax.experimental import pallas as pl
from jax.experimental.pallas import tpu as pltpu

HEADS = 2
LN_EPS = 1e-5


def _round_up(v, m):
    return (v + m - 1) // m * m


# --------------------------------------------------------------------------- pack layouts


def _wpack_entries(F, H, nc):
    d = H // 2
    return [
        ("gat1_w", F,     HEADS * H),
        ("gat2_w", H,     HEADS * H),
        ("gat3_w", H,     HEADS * d),
        ("res_w",  H,     d),
        ("lstm_w", 2 * d, 4 * d),
        ("cls_w1", 2 * d, H),
        ("cls_w2", H,     d),
        ("cls_w3", d,     nc),
    ]


def _wpack_layout(F, H, nc):
    layout, r, maxc = {}, 0, 0
    for name, nrow, ncol in _wpack_entries(F, H, nc):
        layout[name] = (r, nrow, ncol)
        r += _round_up(nrow, 16)          # keep bf16 sublane alignment of row offsets
        maxc = max(maxc, ncol)
    return layout, r, _round_up(maxc, 64)


def _vpack_entries(H, nc):
    d = H // 2
    return [
        ("gat1_b", H), ("ln1_g", H), ("ln1_b", H),
        ("gat2_b", H), ("ln2_g", H), ("ln2_b", H),
        ("gat3_b", d), ("ln3_g", d), ("ln3_b", d),
        ("res_b", d), ("lstm_b", 4 * d),
        ("cls_b1", H), ("cls_g", H), ("cls_be", H),
        ("cls_b2", d), ("cls_b3", nc),
    ]


def _vpack_layout(H, nc):
    entries = _vpack_entries(H, nc)
    layout = {name: (i, w) for i, (name, w) in enumerate(entries)}
    return layout, len(entries), max(w for _, w in entries)


# --------------------------------------------------------------------------- raw parameters


def init_params(key, num_features, num_classes, hidden):
    d = hidden // 2
    ks = jax.random.split(key, 16)

    def nrm(k, shape, s=0.1):
        return jax.random.normal(k, shape, jnp.float32) * s

    p = {}
    # GATConv(heads=2, concat=False) x3
    p['gat1_w'] = nrm(ks[0], (num_features, 2 * hidden))
    p['gat1_asrc'] = nrm(ks[1], (HEADS, hidden))
    p['gat1_adst'] = nrm(ks[2], (HEADS, hidden))
    p['gat1_b'] = jnp.zeros((hidden,), jnp.float32)
    p['ln1_g'] = jnp.ones((hidden,), jnp.float32)
    p['ln1_b'] = jnp.zeros((hidden,), jnp.float32)

    p['gat2_w'] = nrm(ks[3], (hidden, 2 * hidden))
    p['gat2_asrc'] = nrm(ks[4], (HEADS, hidden))
    p['gat2_adst'] = nrm(ks[5], (HEADS, hidden))
    p['gat2_b'] = jnp.zeros((hidden,), jnp.float32)
    p['ln2_g'] = jnp.ones((hidden,), jnp.float32)
    p['ln2_b'] = jnp.zeros((hidden,), jnp.float32)

    p['gat3_w'] = nrm(ks[6], (hidden, 2 * d))
    p['gat3_asrc'] = nrm(ks[7], (HEADS, d))
    p['gat3_adst'] = nrm(ks[8], (HEADS, d))
    p['gat3_b'] = jnp.zeros((d,), jnp.float32)
    p['ln3_g'] = jnp.ones((d,), jnp.float32)
    p['ln3_b'] = jnp.zeros((d,), jnp.float32)

    # residual projection
    p['res_w'] = nrm(ks[9], (hidden, d))
    p['res_b'] = jnp.zeros((d,), jnp.float32)

    # Set2Set LSTM(in=2d, hidden=d), torch gate order i,f,g,o
    p['lstm_wih'] = nrm(ks[10], (4 * d, 2 * d))
    p['lstm_whh'] = nrm(ks[11], (4 * d, d))
    p['lstm_bih'] = jnp.zeros((4 * d,), jnp.float32)
    p['lstm_bhh'] = jnp.zeros((4 * d,), jnp.float32)

    # classifier
    p['cls_w1'] = nrm(ks[12], (2 * d, hidden))
    p['cls_b1'] = jnp.zeros((hidden,), jnp.float32)
    p['cls_g'] = jnp.ones((hidden,), jnp.float32)
    p['cls_be'] = jnp.zeros((hidden,), jnp.float32)
    p['cls_w2'] = nrm(ks[13], (hidden, d))
    p['cls_b2'] = jnp.zeros((d,), jnp.float32)
    p['cls_w3'] = nrm(ks[14], (d, num_classes))
    p['cls_b3'] = jnp.zeros((num_classes,), jnp.float32)
    return p


def _block_diag_rows(a):
    """[H, C] -> [H, H*C]; row h has a[h] in cols h*C:(h+1)*C (row-layout src scores)."""
    Hh, C = a.shape
    eye = jnp.eye(Hh, dtype=a.dtype)
    return (eye[:, :, None] * a[None, :, :]).reshape(Hh, Hh * C)


def _block_diag_cols(a):
    """[H, C] -> [H*C, H]; col h has a[h] in rows h*C:(h+1)*C (column-layout dst scores)."""
    Hh, C = a.shape
    eye = jnp.eye(Hh, dtype=a.dtype)
    return (a[:, :, None] * eye[:, None, :]).reshape(Hh * C, Hh)


def pack_params(p, num_features, num_classes, hidden):
    """One-time host-side packing: weights -> bf16 slab, vectors -> f32 slab, att packs."""
    F, H, nc = num_features, hidden, num_classes
    d = H // 2
    wl, wrows, wcols = _wpack_layout(F, H, nc)
    vl, vrows, vcols = _vpack_layout(H, nc)

    # Fold LSTM: gates = q_star @ W_fold + b, using the Set2Set invariant
    # h_prev == q_star_prev[:, :d] (q == hidden state; both start at zero).
    wih_t = jnp.transpose(p['lstm_wih'])                      # [2d, 4d]
    whh_t = jnp.transpose(p['lstm_whh'])                      # [d, 4d]
    lstm_wfold = jnp.concatenate([wih_t[:d] + whh_t, wih_t[d:]], axis=0)

    wmats = {
        "gat1_w": p['gat1_w'], "gat2_w": p['gat2_w'], "gat3_w": p['gat3_w'],
        "res_w": p['res_w'], "lstm_w": lstm_wfold,
        "cls_w1": p['cls_w1'], "cls_w2": p['cls_w2'], "cls_w3": p['cls_w3'],
    }
    wpack = jnp.zeros((wrows, wcols), jnp.float32)
    for name, (r, nrow, ncol) in wl.items():
        wpack = wpack.at[r:r + nrow, :ncol].set(wmats[name])
    wpack = wpack.astype(jnp.bfloat16)

    vvals = {
        "gat1_b": p['gat1_b'], "ln1_g": p['ln1_g'], "ln1_b": p['ln1_b'],
        "gat2_b": p['gat2_b'], "ln2_g": p['ln2_g'], "ln2_b": p['ln2_b'],
        "gat3_b": p['gat3_b'], "ln3_g": p['ln3_g'], "ln3_b": p['ln3_b'],
        "res_b": p['res_b'], "lstm_b": p['lstm_bih'] + p['lstm_bhh'],
        "cls_b1": p['cls_b1'], "cls_g": p['cls_g'], "cls_be": p['cls_be'],
        "cls_b2": p['cls_b2'], "cls_b3": p['cls_b3'],
    }
    vpack = jnp.zeros((vrows, vcols), jnp.float32)
    for name, (row, w) in vl.items():
        vpack = vpack.at[row, :w].set(vvals[name].reshape(-1))

    # Attention vectors: src in row layout [HEADS, 2C], dst block-diag in col layout [2C, HEADS]
    asrc_pack = jnp.zeros((3 * 16, 2 * H), jnp.float32)
    adst_pack = jnp.zeros((2 * H, 3 * 16), jnp.float32)
    layers = [(p['gat1_asrc'], p['gat1_adst'], H),
              (p['gat2_asrc'], p['gat2_adst'], H),
              (p['gat3_asrc'], p['gat3_adst'], d)]
    for l, (asrc, adst, C) in enumerate(layers):
        asrc_pack = asrc_pack.at[16 * l:16 * l + HEADS, :HEADS * C].set(_block_diag_rows(asrc))
        adst_pack = adst_pack.at[:HEADS * C, 16 * l:16 * l + HEADS].set(_block_diag_cols(adst))

    return {
        "wpack": wpack,
        "vpack": vpack,
        "asrc": asrc_pack.astype(jnp.bfloat16),
        "adst": adst_pack.astype(jnp.bfloat16),
    }


# --------------------------------------------------------------------------- fused kernel


def _make_kernel(N, B, F, H, nc):
    d = H // 2
    wl, _, _ = _wpack_layout(F, H, nc)
    vl, _, _ = _vpack_layout(H, nc)

    def kernel(x_ref, adj_ref, mask_ref, wpack_ref, vpack_ref, asrc_ref, adst_ref, out_ref):
        x = x_ref[...]                 # [N, F]  bf16
        adj = adj_ref[...]             # [N, N]  bf16 0/1 (adj[i,j]=1 iff edge j->i, + self-loops)
        mask = mask_ref[...]           # [B, N]  bf16 0/1 one-hot graph membership
        V = vpack_ref[...]             # [16, 64] f32
        AS = asrc_ref[...]             # [48, 2H] bf16
        AD = adst_ref[...]             # [2H, 48] bf16

        def wslice(name):
            r, nrow, ncol = wl[name]
            return wpack_ref[r:r + nrow, 0:ncol]          # bf16 weight window

        def vrow(name):
            row, w = vl[name]
            return V[row:row + 1, 0:w]                    # [1, w] f32

        def layer_norm(z, gname, bname):
            mean = jnp.mean(z, axis=-1, keepdims=True)
            var = jnp.mean(jnp.square(z - mean), axis=-1, keepdims=True)
            return (z - mean) * lax.rsqrt(var + LN_EPS) * vrow(gname) + vrow(bname)

        def gat(z_bf, layer, C, wname, bname):
            """Dense GATConv: heads=2, concat=False (head mean), LeakyReLU(0.2), masked softmax."""
            h = jnp.dot(z_bf, wslice(wname), preferred_element_type=jnp.float32)   # [N, 2C] f32
            h_bf = h.astype(jnp.bfloat16)
            adst = AD[0:HEADS * C, 16 * layer:16 * layer + HEADS]                  # [2C, HEADS]
            asrc = AS[16 * layer:16 * layer + HEADS, 0:HEADS * C]                  # [HEADS, 2C]
            a_dst = jnp.dot(h_bf, adst, preferred_element_type=jnp.float32)        # [N, HEADS] cols
            a_src = jnp.einsum('hc,nc->hn', asrc, h_bf,
                               preferred_element_type=jnp.float32)                 # [HEADS, N] rows
            acc = jnp.zeros((N, C), jnp.float32)
            for hd in range(HEADS):                                                # static unroll
                e = a_dst[:, hd:hd + 1] + a_src[hd:hd + 1, :]                      # e[i,j]=dst_i+src_j
                e = jnp.where(e > 0, e, 0.2 * e)                                   # LeakyReLU(0.2)
                e = jnp.where(adj > 0, e, -1e30)                                   # single masking pass
                e = e - jnp.max(e, axis=-1, keepdims=True)
                p = jnp.exp(e)                                                     # non-edges -> 0
                alpha = p * pl.reciprocal(jnp.sum(p, axis=-1, keepdims=True), approx=True)
                acc = acc + jnp.dot(alpha.astype(jnp.bfloat16),
                                    h_bf[:, hd * C:(hd + 1) * C],
                                    preferred_element_type=jnp.float32)
            return acc * (1.0 / HEADS) + vrow(bname)

        # ---- GAT stack (Dropout(0.3): eval-mode identity)
        x1 = jnp.maximum(layer_norm(gat(x, 0, H, "gat1_w", "gat1_b"), "ln1_g", "ln1_b"), 0.0)
        x1_bf = x1.astype(jnp.bfloat16)
        x2 = jnp.maximum(layer_norm(gat(x1_bf, 1, H, "gat2_w", "gat2_b"), "ln2_g", "ln2_b") + x1, 0.0)
        x2_bf = x2.astype(jnp.bfloat16)
        residual = jnp.dot(x2_bf, wslice("res_w"),
                           preferred_element_type=jnp.float32) + vrow("res_b")
        x3 = jnp.maximum(layer_norm(gat(x2_bf, 2, d, "gat3_w", "gat3_b"), "ln3_g", "ln3_b")
                         + residual, 0.0)
        x3_bf = x3.astype(jnp.bfloat16)

        # ---- Set2Set pooling (processing_steps=3); single folded gate matmul per step.
        w_lstm = wslice("lstm_w")                       # [2d, 4d] bf16 (folded W_ih/W_hh)
        lstm_b = vrow("lstm_b")                         # [1, 4d] f32
        c = jnp.zeros((B, d), jnp.float32)
        q_star = jnp.zeros((B, 2 * d), jnp.float32)
        for _ in range(3):                              # static unroll, tiny trip count
            gates = jnp.dot(q_star.astype(jnp.bfloat16), w_lstm,
                            preferred_element_type=jnp.float32) + lstm_b           # [B, 4d]
            i_g = jax.nn.sigmoid(gates[:, 0:d])
            f_g = jax.nn.sigmoid(gates[:, d:2 * d])
            g_g = jnp.tanh(gates[:, 2 * d:3 * d])
            o_g = jax.nn.sigmoid(gates[:, 3 * d:4 * d])
            c = f_g * c + i_g * g_g
            q = o_g * jnp.tanh(c)                       # q == new LSTM hidden state
            e = jnp.einsum('bd,nd->bn', q.astype(jnp.bfloat16), x3_bf,
                           preferred_element_type=jnp.float32)                     # [B, N]
            e = jnp.where(mask > 0, e, -1e30)
            e = e - jnp.max(e, axis=-1, keepdims=True)
            p = jnp.exp(e)
            a = p / jnp.sum(p, axis=-1, keepdims=True)  # exact recip on the final pooling path
            r = jnp.dot(a.astype(jnp.bfloat16), x3_bf, preferred_element_type=jnp.float32)  # [B, d]
            q_star = jnp.concatenate([q, r], axis=-1)   # [B, 2d]

        # ---- classifier: Linear->ReLU->LayerNorm->(drop)->Linear->ReLU->(drop)->Linear->log_softmax
        h1 = jnp.maximum(jnp.dot(q_star.astype(jnp.bfloat16), wslice("cls_w1"),
                                 preferred_element_type=jnp.float32) + vrow("cls_b1"), 0.0)
        h1 = layer_norm(h1, "cls_g", "cls_be")
        h2 = jnp.maximum(jnp.dot(h1.astype(jnp.bfloat16), wslice("cls_w2"),
                                 preferred_element_type=jnp.float32) + vrow("cls_b2"), 0.0)
        logits = jnp.dot(h2.astype(jnp.bfloat16), wslice("cls_w3"),
                         preferred_element_type=jnp.float32) + vrow("cls_b3")
        z = logits - jnp.max(logits, axis=-1, keepdims=True)
        out_ref[...] = z - jnp.log(jnp.sum(jnp.exp(z), axis=-1, keepdims=True))

    return kernel


# --------------------------------------------------------------------------- pallas_call glue


def build_forward(G, N, B, num_features, num_classes, hidden):
    F, H, nc = num_features, hidden, num_classes
    d = H // 2
    _, wrows, wcols = _wpack_layout(F, H, nc)
    _, vrows, vcols = _vpack_layout(H, nc)
    kernel = _make_kernel(N, B, F, H, nc)

    # advisory cost estimate (per-block matmul flops, transcendentals, HBM bytes)
    fl = (2 * N * F * 2 * H + 2 * N * H * 2 * H + 2 * N * H * 2 * d       # GAT projections
          + 2 * N * 2 * H * 2 * HEADS * 2 + 2 * N * 2 * d * 2 * HEADS    # attention scores
          + 2 * HEADS * N * N * (H + H + d)                              # alpha @ Wh
          + 2 * N * H * d                                                # residual projection
          + 3 * (2 * B * 2 * d * 4 * d + 4 * B * N * d)                  # Set2Set
          + 2 * B * (2 * d * H + H * d + d * nc))                        # classifier
    tr = 3 * HEADS * N * N + 3 * (B * N + 3 * B * 4 * d) + B * nc
    data_bytes = G * ((N * F + N * N + B * N) * 2 + B * nc * 4)
    param_bytes = wrows * wcols * 2 + vrows * vcols * 4 + 48 * 2 * H * 2 + 2 * H * 48 * 2
    cost = pl.CostEstimate(flops=G * fl, transcendentals=G * tr,
                           bytes_accessed=data_bytes + param_bytes)

    fwd = pl.pallas_call(
        kernel,
        out_shape=jax.ShapeDtypeStruct((G, B, nc), jnp.float32),
        grid=(G,),
        in_specs=[
            pl.BlockSpec((None, N, F), lambda g: (g, 0, 0)),   # x        (per-block)
            pl.BlockSpec((None, N, N), lambda g: (g, 0, 0)),   # adj      (per-block)
            pl.BlockSpec((None, B, N), lambda g: (g, 0, 0)),   # mask     (per-block)
            pl.BlockSpec((wrows, wcols), lambda g: (0, 0)),    # weight pack (grid-invariant)
            pl.BlockSpec((vrows, vcols), lambda g: (0, 0)),    # vector pack
            pl.BlockSpec((48, 2 * H), lambda g: (0, 0)),       # att src pack
            pl.BlockSpec((2 * H, 48), lambda g: (0, 0)),       # att dst pack
        ],
        out_specs=pl.BlockSpec((None, B, nc), lambda g: (g, 0, 0)),
        compiler_params=pltpu.CompilerParams(dimension_semantics=("parallel",)),
        cost_estimate=cost,
    )
    # NOTE: for large N, add a destination-row grid axis tiling adj / the [N,N] score slabs
    # and set vmem_limit_bytes explicitly (smaller tiles on v7x: 64 MiB VMEM).

    def _bf16(a):
        return a if a.dtype == jnp.bfloat16 else a.astype(jnp.bfloat16)

    def forward(packed, x_blocks, adj_blocks, mask_blocks):
        return fwd(_bf16(x_blocks), _bf16(adj_blocks), _bf16(mask_blocks),
                   packed["wpack"], packed["vpack"], packed["asrc"], packed["adst"])

    return forward


# --------------------------------------------------------------------------- demo


if __name__ == "__main__":
    NUM_FEATURES = 16
    NUM_CLASSES = 5
    HIDDEN = 32
    N = 16        # nodes per graph block
    B = 2         # graphs per block (first 8 nodes -> graph 0, last 8 -> graph 1)
    G = 4         # independent graph blocks batched behind the grid

    key = jax.random.PRNGKey(0)
    kx, kp = jax.random.split(key)

    # node features for every block (bf16 at rest: halves the DMA)
    x = jax.random.normal(kx, (G, N, NUM_FEATURES), jnp.float32).astype(jnp.bfloat16)

    # deterministic edge structure per block: ring + skip edges within each graph
    edges = []
    for gph in range(B):
        base = gph * 8
        for i in range(8):
            j = (i + 1) % 8
            edges.append((base + i, base + j))
            edges.append((base + j, base + i))
            edges.append((base + i, base + (i + 3) % 8))
    edge_index = jnp.array(edges, dtype=jnp.int32).T          # row 0 = src, row 1 = dst

    # dense adjacency adj[dst, src] with self loops (PyG GATConv add_self_loops=True)
    adj1 = jnp.zeros((N, N), jnp.float32).at[edge_index[1], edge_index[0]].set(1.0)
    adj1 = jnp.maximum(adj1, jnp.eye(N, dtype=jnp.float32))
    adj = jnp.broadcast_to(adj1, (G, N, N)).astype(jnp.bfloat16)

    # batch vector -> one-hot graph membership mask [B, N], replicated per block
    batch_vec = jnp.array([0] * 8 + [1] * 8, dtype=jnp.int32)
    mask1 = (batch_vec[None, :] == jnp.arange(B, dtype=jnp.int32)[:, None]).astype(jnp.float32)
    mask = jnp.broadcast_to(mask1, (G, B, N)).astype(jnp.bfloat16)

    raw_params = init_params(kp, NUM_FEATURES, NUM_CLASSES, HIDDEN)
    packed = pack_params(raw_params, NUM_FEATURES, NUM_CLASSES, HIDDEN)   # one-time host packing

    forward = build_forward(G, N, B, NUM_FEATURES, NUM_CLASSES, HIDDEN)
    out = jax.jit(forward)(packed, x, adj, mask)
    out = jax.block_until_ready(out)

    assert out.shape == (G, B, NUM_CLASSES)
    assert bool(jnp.all(jnp.isfinite(out)))
    # per-graph log-softmax rows should (approximately) exponentiate-sum to 1
    assert bool(jnp.all(jnp.abs(jnp.sum(jnp.exp(out), axis=-1) - 1.0) < 1e-2))
    print("KERNEL_OK")
</pallas_src>

<mosaic_0001>
module attributes {stable_mosaic.version = 11 : i64} {
  func.func @kernel(%arg0: i32, %arg1: memref<1x16x16xbf16, #tpu.memory_space<vmem>>, %arg2: memref<1x16x16xbf16, #tpu.memory_space<vmem>>, %arg3: memref<1x2x16xbf16, #tpu.memory_space<vmem>>, %arg4: memref<224x64xbf16, #tpu.memory_space<vmem>>, %arg5: memref<16x64xf32, #tpu.memory_space<vmem>>, %arg6: memref<48x64xbf16, #tpu.memory_space<vmem>>, %arg7: memref<64x48xbf16, #tpu.memory_space<vmem>>, %arg8: memref<1x2x5xf32, #tpu.memory_space<vmem>>) attributes {dimension_semantics = [#tpu.dimension_semantics<parallel>], iteration_bounds = array<i64: 4>, scalar_prefetch = 0 : i64, scratch_operands = 0 : i64, tpu.core_type = #tpu.core_type<tc>, window_params = [{transform_indices = @transform_0, window_bounds = array<i64: 1, 16, 16>}, {transform_indices = @transform_1, window_bounds = array<i64: 1, 16, 16>}, {transform_indices = @transform_2, window_bounds = array<i64: 1, 2, 16>}, {pipeline_mode = #tpu.pipeline_mode<synchronous>, transform_indices = @transform_3, window_bounds = array<i64: 224, 64>}, {pipeline_mode = #tpu.pipeline_mode<synchronous>, transform_indices = @transform_4, window_bounds = array<i64: 16, 64>}, {pipeline_mode = #tpu.pipeline_mode<synchronous>, transform_indices = @transform_5, window_bounds = array<i64: 48, 64>}, {pipeline_mode = #tpu.pipeline_mode<synchronous>, transform_indices = @transform_6, window_bounds = array<i64: 64, 48>}, {transform_indices = @transform_7, window_bounds = array<i64: 1, 2, 5>}]} {
    %c0 = arith.constant 0 : index
    %c0_0 = arith.constant 0 : index
    %c0_1 = arith.constant 0 : index
    %0 = vector.load %arg1[%c0, %c0_0, %c0_1] : memref<1x16x16xbf16, #tpu.memory_space<vmem>>, vector<1x16x16xbf16>
    %1 = vector.shape_cast %0 : vector<1x16x16xbf16> to vector<16x16xbf16>
    %c0_2 = arith.constant 0 : index
    %c0_3 = arith.constant 0 : index
    %c0_4 = arith.constant 0 : index
    %2 = vector.load %arg2[%c0_2, %c0_3, %c0_4] : memref<1x16x16xbf16, #tpu.memory_space<vmem>>, vector<1x16x16xbf16>
    %3 = vector.shape_cast %2 : vector<1x16x16xbf16> to vector<16x16xbf16>
    %c0_5 = arith.constant 0 : index
    %c0_6 = arith.constant 0 : index
    %c0_7 = arith.constant 0 : index
    %4 = vector.load %arg3[%c0_5, %c0_6, %c0_7] : memref<1x2x16xbf16, #tpu.memory_space<vmem>>, vector<1x2x16xbf16>
    %5 = vector.shape_cast %4 : vector<1x2x16xbf16> to vector<2x16xbf16>
    %c0_8 = arith.constant 0 : index
    %c0_9 = arith.constant 0 : index
    %6 = vector.load %arg5[%c0_8, %c0_9] : memref<16x64xf32, #tpu.memory_space<vmem>>, vector<16x64xf32>
    %c0_10 = arith.constant 0 : index
    %c0_11 = arith.constant 0 : index
    %7 = vector.load %arg6[%c0_10, %c0_11] : memref<48x64xbf16, #tpu.memory_space<vmem>>, vector<48x64xbf16>
    %c0_12 = arith.constant 0 : index
    %c0_13 = arith.constant 0 : index
    %8 = vector.load %arg7[%c0_12, %c0_13] : memref<64x48xbf16, #tpu.memory_space<vmem>>, vector<64x48xbf16>
    %c0_14 = arith.constant 0 : index
    %c0_15 = arith.constant 0 : index
    %9 = vector.load %arg4[%c0_14, %c0_15] : memref<224x64xbf16, #tpu.memory_space<vmem>>, vector<16x64xbf16>
    %cst = arith.constant dense<0.000000e+00> : vector<16x64xf32>
    %10 = tpu.matmul %1, %9, %cst {dimension_numbers = #tpu.dot_dimension_numbers<[1], [0], [0], [1], [0, 0, 1, 1], [], []>} : vector<16x16xbf16>, vector<16x64xbf16>, vector<16x64xf32> -> vector<16x64xf32>
    %11 = arith.truncf %10 : vector<16x64xf32> to vector<16x64xbf16>
    %12 = vector.extract_strided_slice %8 {offsets = [0, 0], sizes = [64, 2], strides = [1, 1]} : vector<64x48xbf16> to vector<64x2xbf16>
    %13 = vector.extract_strided_slice %7 {offsets = [0, 0], sizes = [2, 64], strides = [1, 1]} : vector<48x64xbf16> to vector<2x64xbf16>
    %cst_16 = arith.constant dense<0.000000e+00> : vector<16x2xf32>
    %14 = tpu.matmul %11, %12, %cst_16 {dimension_numbers = #tpu.dot_dimension_numbers<[1], [0], [0], [1], [0, 0, 1, 1], [], []>} : vector<16x64xbf16>, vector<64x2xbf16>, vector<16x2xf32> -> vector<16x2xf32>
    "tpu.trace_start"() <{level = 10 : i32, message = "hc,nc->hn"}> : () -> ()
    %cst_17 = arith.constant dense<0.000000e+00> : vector<2x16xf32>
    %15 = tpu.matmul %13, %11, %cst_17 {dimension_numbers = #tpu.dot_dimension_numbers<[1], [1], [0], [0], [0, 0, 1, 0], [], []>} : vector<2x64xbf16>, vector<16x64xbf16>, vector<2x16xf32> -> vector<2x16xf32>
    %cst_18 = arith.constant 0.000000e+00 : f32
    "tpu.trace_stop"() : () -> ()
    %16 = vector.broadcast %cst_18 : f32 to vector<16x32xf32>
    %17 = vector.extract_strided_slice %14 {offsets = [0, 0], sizes = [16, 1], strides = [1, 1]} : vector<16x2xf32> to vector<16x1xf32>
    %18 = vector.extract_strided_slice %15 {offsets = [0, 0], sizes = [1, 16], strides = [1, 1]} : vector<2x16xf32> to vector<1x16xf32>
    %19 = vector.broadcast %17 : vector<16x1xf32> to vector<16x16xf32>
    %20 = vector.broadcast %18 : vector<1x16xf32> to vector<16x16xf32>
    %21 = arith.addf %19, %20 : vector<16x16xf32>
    %cst_19 = arith.constant 0.000000e+00 : f32
    %22 = vector.broadcast %cst_19 : f32 to vector<16x16xf32>
    %23 = arith.cmpf ogt, %21, %22 : vector<16x16xf32>
    %cst_20 = arith.constant 2.000000e-01 : f32
    %24 = vector.broadcast %cst_20 : f32 to vector<16x16xf32>
    %25 = arith.mulf %24, %21 : vector<16x16xf32>
    %26 = arith.select %23, %21, %25 : vector<16x16xi1>, vector<16x16xf32>
    %cst_21 = arith.constant 0.000000e+00 : bf16
    %27 = vector.broadcast %cst_21 : bf16 to vector<16x16xbf16>
    %28 = arith.cmpf ogt, %3, %27 : vector<16x16xbf16>
    %cst_22 = arith.constant -1.000000e+30 : f32
    %29 = vector.broadcast %cst_22 : f32 to vector<16x16xf32>
    %30 = arith.select %28, %26, %29 : vector<16x16xi1>, vector<16x16xf32>
    %cst_23 = arith.constant dense<0xFF800000> : vector<16xf32>
    %31 = vector.multi_reduction <maximumf>, %30, %cst_23 [1] : vector<16x16xf32> to vector<16xf32>
    %32 = vector.shape_cast %31 : vector<16xf32> to vector<16x1xf32>
    %33 = vector.broadcast %32 : vector<16x1xf32> to vector<16x16xf32>
    %34 = arith.subf %30, %33 : vector<16x16xf32>
    %35 = math.exp %34 : vector<16x16xf32>
    %cst_24 = arith.constant dense<0.000000e+00> : vector<16xf32>
    %36 = vector.multi_reduction <add>, %35, %cst_24 [1] : vector<16x16xf32> to vector<16xf32>
    %37 = vector.shape_cast %36 : vector<16xf32> to vector<16x1xf32>
    %38 = tpu.reciprocal %37 {approx = true} : vector<16x1xf32> -> vector<16x1xf32>
    %39 = vector.broadcast %38 : vector<16x1xf32> to vector<16x16xf32>
    %40 = arith.mulf %35, %39 : vector<16x16xf32>
    %41 = arith.truncf %40 : vector<16x16xf32> to vector<16x16xbf16>
    %42 = vector.extract_strided_slice %11 {offsets = [0, 0], sizes = [16, 32], strides = [1, 1]} : vector<16x64xbf16> to vector<16x32xbf16>
    %cst_25 = arith.constant dense<0.000000e+00> : vector<16x32xf32>
    %43 = tpu.matmul %41, %42, %cst_25 {dimension_numbers = #tpu.dot_dimension_numbers<[1], [0], [0], [1], [0, 0, 1, 1], [], []>} : vector<16x16xbf16>, vector<16x32xbf16>, vector<16x32xf32> -> vector<16x32xf32>
    %44 = arith.addf %16, %43 : vector<16x32xf32>
    %45 = vector.extract_strided_slice %14 {offsets = [0, 1], sizes = [16, 1], strides = [1, 1]} : vector<16x2xf32> to vector<16x1xf32>
    %46 = vector.extract_strided_slice %15 {offsets = [1, 0], sizes = [1, 16], strides = [1, 1]} : vector<2x16xf32> to vector<1x16xf32>
    %47 = vector.broadcast %45 : vector<16x1xf32> to vector<16x16xf32>
    %48 = vector.broadcast %46 : vector<1x16xf32> to vector<16x16xf32>
    %49 = arith.addf %47, %48 : vector<16x16xf32>
    %cst_26 = arith.constant 0.000000e+00 : f32
    %50 = vector.broadcast %cst_26 : f32 to vector<16x16xf32>
    %51 = arith.cmpf ogt, %49, %50 : vector<16x16xf32>
    %cst_27 = arith.constant 2.000000e-01 : f32
    %52 = vector.broadcast %cst_27 : f32 to vector<16x16xf32>
    %53 = arith.mulf %52, %49 : vector<16x16xf32>
    %54 = arith.select %51, %49, %53 : vector<16x16xi1>, vector<16x16xf32>
    %cst_28 = arith.constant 0.000000e+00 : bf16
    %55 = vector.broadcast %cst_28 : bf16 to vector<16x16xbf16>
    %56 = arith.cmpf ogt, %3, %55 : vector<16x16xbf16>
    %cst_29 = arith.constant -1.000000e+30 : f32
    %57 = vector.broadcast %cst_29 : f32 to vector<16x16xf32>
    %58 = arith.select %56, %54, %57 : vector<16x16xi1>, vector<16x16xf32>
    %cst_30 = arith.constant dense<0xFF800000> : vector<16xf32>
    %59 = vector.multi_reduction <maximumf>, %58, %cst_30 [1] : vector<16x16xf32> to vector<16xf32>
    %60 = vector.shape_cast %59 : vector<16xf32> to vector<16x1xf32>
    %61 = vector.broadcast %60 : vector<16x1xf32> to vector<16x16xf32>
    %62 = arith.subf %58, %61 : vector<16x16xf32>
    %63 = math.exp %62 : vector<16x16xf32>
    %cst_31 = arith.constant dense<0.000000e+00> : vector<16xf32>
    %64 = vector.multi_reduction <add>, %63, %cst_31 [1] : vector<16x16xf32> to vector<16xf32>
    %65 = vector.shape_cast %64 : vector<16xf32> to vector<16x1xf32>
    %66 = tpu.reciprocal %65 {approx = true} : vector<16x1xf32> -> vector<16x1xf32>
    %67 = vector.broadcast %66 : vector<16x1xf32> to vector<16x16xf32>
    %68 = arith.mulf %63, %67 : vector<16x16xf32>
    %69 = arith.truncf %68 : vector<16x16xf32> to vector<16x16xbf16>
    %70 = vector.extract_strided_slice %11 {offsets = [0, 32], sizes = [16, 32], strides = [1, 1]} : vector<16x64xbf16> to vector<16x32xbf16>
    %cst_32 = arith.constant dense<0.000000e+00> : vector<16x32xf32>
    %71 = tpu.matmul %69, %70, %cst_32 {dimension_numbers = #tpu.dot_dimension_numbers<[1], [0], [0], [1], [0, 0, 1, 1], [], []>} : vector<16x16xbf16>, vector<16x32xbf16>, vector<16x32xf32> -> vector<16x32xf32>
    %72 = arith.addf %44, %71 : vector<16x32xf32>
    %cst_33 = arith.constant 5.000000e-01 : f32
    %73 = vector.broadcast %cst_33 : f32 to vector<16x32xf32>
    %74 = arith.mulf %72, %73 : vector<16x32xf32>
    %75 = vector.extract_strided_slice %6 {offsets = [0, 0], sizes = [1, 32], strides = [1, 1]} : vector<16x64xf32> to vector<1x32xf32>
    %76 = vector.broadcast %75 : vector<1x32xf32> to vector<16x32xf32>
    %77 = arith.addf %74, %76 : vector<16x32xf32>
    %cst_34 = arith.constant dense<0.000000e+00> : vector<16xf32>
    %78 = vector.multi_reduction <add>, %77, %cst_34 [1] : vector<16x32xf32> to vector<16xf32>
    %79 = vector.shape_cast %78 : vector<16xf32> to vector<16x1xf32>
    %cst_35 = arith.constant 3.200000e+01 : f32
    %80 = vector.broadcast %cst_35 : f32 to vector<16x1xf32>
    %81 = arith.divf %79, %80 : vector<16x1xf32>
    %82 = vector.broadcast %81 : vector<16x1xf32> to vector<16x32xf32>
    %83 = arith.subf %77, %82 : vector<16x32xf32>
    %84 = arith.mulf %83, %83 : vector<16x32xf32>
    %cst_36 = arith.constant dense<0.000000e+00> : vector<16xf32>
    %85 = vector.multi_reduction <add>, %84, %cst_36 [1] : vector<16x32xf32> to vector<16xf32>
    %86 = vector.shape_cast %85 : vector<16xf32> to vector<16x1xf32>
    %cst_37 = arith.constant 3.200000e+01 : f32
    %87 = vector.broadcast %cst_37 : f32 to vector<16x1xf32>
    %88 = arith.divf %86, %87 : vector<16x1xf32>
    %89 = vector.broadcast %81 : vector<16x1xf32> to vector<16x32xf32>
    %90 = arith.subf %77, %89 : vector<16x32xf32>
    %cst_38 = arith.constant 9.99999974E-6 : f32
    %91 = vector.broadcast %cst_38 : f32 to vector<16x1xf32>
    %92 = arith.addf %88, %91 : vector<16x1xf32>
    %93 = math.rsqrt %92 : vector<16x1xf32>
    %94 = vector.broadcast %93 : vector<16x1xf32> to vector<16x32xf32>
    %95 = arith.mulf %90, %94 : vector<16x32xf32>
    %96 = vector.extract_strided_slice %6 {offsets = [1, 0], sizes = [1, 32], strides = [1, 1]} : vector<16x64xf32> to vector<1x32xf32>
    %97 = vector.broadcast %96 : vector<1x32xf32> to vector<16x32xf32>
    %98 = arith.mulf %95, %97 : vector<16x32xf32>
    %99 = vector.extract_strided_slice %6 {offsets = [2, 0], sizes = [1, 32], strides = [1, 1]} : vector<16x64xf32> to vector<1x32xf32>
    %100 = vector.broadcast %99 : vector<1x32xf32> to vector<16x32xf32>
    %101 = arith.addf %98, %100 : vector<16x32xf32>
    %cst_39 = arith.constant 0.000000e+00 : f32
    %102 = vector.broadcast %cst_39 : f32 to vector<16x32xf32>
    %103 = arith.maximumf %101, %102 : vector<16x32xf32>
    %104 = arith.truncf %103 : vector<16x32xf32> to vector<16x32xbf16>
    %c16 = arith.constant 16 : index
    %c0_40 = arith.constant 0 : index
    %105 = vector.load %arg4[%c16, %c0_40] : memref<224x64xbf16, #tpu.memory_space<vmem>>, vector<32x64xbf16>
    %cst_41 = arith.constant dense<0.000000e+00> : vector<16x64xf32>
    %106 = tpu.matmul %104, %105, %cst_41 {dimension_numbers = #tpu.dot_dimension_numbers<[1], [0], [0], [1], [0, 0, 1, 1], [], []>} : vector<16x32xbf16>, vector<32x64xbf16>, vector<16x64xf32> -> vector<16x64xf32>
    %107 = arith.truncf %106 : vector<16x64xf32> to vector<16x64xbf16>
    %108 = vector.extract_strided_slice %8 {offsets = [0, 16], sizes = [64, 2], strides = [1, 1]} : vector<64x48xbf16> to vector<64x2xbf16>
    %109 = vector.extract_strided_slice %7 {offsets = [16, 0], sizes = [2, 64], strides = [1, 1]} : vector<48x64xbf16> to vector<2x64xbf16>
    %cst_42 = arith.constant dense<0.000000e+00> : vector<16x2xf32>
    %110 = tpu.matmul %107, %108, %cst_42 {dimension_numbers = #tpu.dot_dimension_numbers<[1], [0], [0], [1], [0, 0, 1, 1], [], []>} : vector<16x64xbf16>, vector<64x2xbf16>, vector<16x2xf32> -> vector<16x2xf32>
    "tpu.trace_start"() <{level = 10 : i32, message = "hc,nc->hn"}> : () -> ()
    %cst_43 = arith.constant dense<0.000000e+00> : vector<2x16xf32>
    %111 = tpu.matmul %109, %107, %cst_43 {dimension_numbers = #tpu.dot_dimension_numbers<[1], [1], [0], [0], [0, 0, 1, 0], [], []>} : vector<2x64xbf16>, vector<16x64xbf16>, vector<2x16xf32> -> vector<2x16xf32>
    %cst_44 = arith.constant 0.000000e+00 : f32
    "tpu.trace_stop"() : () -> ()
    %112 = vector.broadcast %cst_44 : f32 to vector<16x32xf32>
    %113 = vector.extract_strided_slice %110 {offsets = [0, 0], sizes = [16, 1], strides = [1, 1]} : vector<16x2xf32> to vector<16x1xf32>
    %114 = vector.extract_strided_slice %111 {offsets = [0, 0], sizes = [1, 16], strides = [1, 1]} : vector<2x16xf32> to vector<1x16xf32>
    %115 = vector.broadcast %113 : vector<16x1xf32> to vector<16x16xf32>
    %116 = vector.broadcast %114 : vector<1x16xf32> to vector<16x16xf32>
    %117 = arith.addf %115, %116 : vector<16x16xf32>
    %cst_45 = arith.constant 0.000000e+00 : f32
    %118 = vector.broadcast %cst_45 : f32 to vector<16x16xf32>
    %119 = arith.cmpf ogt, %117, %118 : vector<16x16xf32>
    %cst_46 = arith.constant 2.000000e-01 : f32
    %120 = vector.broadcast %cst_46 : f32 to vector<16x16xf32>
    %121 = arith.mulf %120, %117 : vector<16x16xf32>
    %122 = arith.select %119, %117, %121 : vector<16x16xi1>, vector<16x16xf32>
    %cst_47 = arith.constant 0.000000e+00 : bf16
    %123 = vector.broadcast %cst_47 : bf16 to vector<16x16xbf16>
    %124 = arith.cmpf ogt, %3, %123 : vector<16x16xbf16>
    %cst_48 = arith.constant -1.000000e+30 : f32
    %125 = vector.broadcast %cst_48 : f32 to vector<16x16xf32>
    %126 = arith.select %124, %122, %125 : vector<16x16xi1>, vector<16x16xf32>
    %cst_49 = arith.constant dense<0xFF800000> : vector<16xf32>
    %127 = vector.multi_reduction <maximumf>, %126, %cst_49 [1] : vector<16x16xf32> to vector<16xf32>
    %128 = vector.shape_cast %127 : vector<16xf32> to vector<16x1xf32>
    %129 = vector.broadcast %128 : vector<16x1xf32> to vector<16x16xf32>
    %130 = arith.subf %126, %129 : vector<16x16xf32>
    %131 = math.exp %130 : vector<16x16xf32>
    %cst_50 = arith.constant dense<0.000000e+00> : vector<16xf32>
    %132 = vector.multi_reduction <add>, %131, %cst_50 [1] : vector<16x16xf32> to vector<16xf32>
    %133 = vector.shape_cast %132 : vector<16xf32> to vector<16x1xf32>
    %134 = tpu.reciprocal %133 {approx = true} : vector<16x1xf32> -> vector<16x1xf32>
    %135 = vector.broadcast %134 : vector<16x1xf32> to vector<16x16xf32>
    %136 = arith.mulf %131, %135 : vector<16x16xf32>
    %137 = arith.truncf %136 : vector<16x16xf32> to vector<16x16xbf16>
    %138 = vector.extract_strided_slice %107 {offsets = [0, 0], sizes = [16, 32], strides = [1, 1]} : vector<16x64xbf16> to vector<16x32xbf16>
    %cst_51 = arith.constant dense<0.000000e+00> : vector<16x32xf32>
    %139 = tpu.matmul %137, %138, %cst_51 {dimension_numbers = #tpu.dot_dimension_numbers<[1], [0], [0], [1], [0, 0, 1, 1], [], []>} : vector<16x16xbf16>, vector<16x32xbf16>, vector<16x32xf32> -> vector<16x32xf32>
    %140 = arith.addf %112, %139 : vector<16x32xf32>
    %141 = vector.extract_strided_slice %110 {offsets = [0, 1], sizes = [16, 1], strides = [1, 1]} : vector<16x2xf32> to vector<16x1xf32>
    %142 = vector.extract_strided_slice %111 {offsets = [1, 0], sizes = [1, 16], strides = [1, 1]} : vector<2x16xf32> to vector<1x16xf32>
    %143 = vector.broadcast %141 : vector<16x1xf32> to vector<16x16xf32>
    %144 = vector.broadcast %142 : vector<1x16xf32> to vector<16x16xf32>
    %145 = arith.addf %143, %144 : vector<16x16xf32>
    %cst_52 = arith.constant 0.000000e+00 : f32
    %146 = vector.broadcast %cst_52 : f32 to vector<16x16xf32>
    %147 = arith.cmpf ogt, %145, %146 : vector<16x16xf32>
    %cst_53 = arith.constant 2.000000e-01 : f32
    %148 = vector.broadcast %cst_53 : f32 to vector<16x16xf32>
    %149 = arith.mulf %148, %145 : vector<16x16xf32>
    %150 = arith.select %147, %145, %149 : vector<16x16xi1>, vector<16x16xf32>
    %cst_54 = arith.constant 0.000000e+00 : bf16
    %151 = vector.broadcast %cst_54 : bf16 to vector<16x16xbf16>
    %152 = arith.cmpf ogt, %3, %151 : vector<16x16xbf16>
    %cst_55 = arith.constant -1.000000e+30 : f32
    %153 = vector.broadcast %cst_55 : f32 to vector<16x16xf32>
    %154 = arith.select %152, %150, %153 : vector<16x16xi1>, vector<16x16xf32>
    %cst_56 = arith.constant dense<0xFF800000> : vector<16xf32>
    %155 = vector.multi_reduction <maximumf>, %154, %cst_56 [1] : vector<16x16xf32> to vector<16xf32>
    %156 = vector.shape_cast %155 : vector<16xf32> to vector<16x1xf32>
    %157 = vector.broadcast %156 : vector<16x1xf32> to vector<16x16xf32>
    %158 = arith.subf %154, %157 : vector<16x16xf32>
    %159 = math.exp %158 : vector<16x16xf32>
    %cst_57 = arith.constant dense<0.000000e+00> : vector<16xf32>
    %160 = vector.multi_reduction <add>, %159, %cst_57 [1] : vector<16x16xf32> to vector<16xf32>
    %161 = vector.shape_cast %160 : vector<16xf32> to vector<16x1xf32>
    %162 = tpu.reciprocal %161 {approx = true} : vector<16x1xf32> -> vector<16x1xf32>
    %163 = vector.broadcast %162 : vector<16x1xf32> to vector<16x16xf32>
    %164 = arith.mulf %159, %163 : vector<16x16xf32>
    %165 = arith.truncf %164 : vector<16x16xf32> to vector<16x16xbf16>
    %166 = vector.extract_strided_slice %107 {offsets = [0, 32], sizes = [16, 32], strides = [1, 1]} : vector<16x64xbf16> to vector<16x32xbf16>
    %cst_58 = arith.constant dense<0.000000e+00> : vector<16x32xf32>
    %167 = tpu.matmul %165, %166, %cst_58 {dimension_numbers = #tpu.dot_dimension_numbers<[1], [0], [0], [1], [0, 0, 1, 1], [], []>} : vector<16x16xbf16>, vector<16x32xbf16>, vector<16x32xf32> -> vector<16x32xf32>
    %168 = arith.addf %140, %167 : vector<16x32xf32>
    %cst_59 = arith.constant 5.000000e-01 : f32
    %169 = vector.broadcast %cst_59 : f32 to vector<16x32xf32>
    %170 = arith.mulf %168, %169 : vector<16x32xf32>
    %171 = vector.extract_strided_slice %6 {offsets = [3, 0], sizes = [1, 32], strides = [1, 1]} : vector<16x64xf32> to vector<1x32xf32>
    %172 = vector.broadcast %171 : vector<1x32xf32> to vector<16x32xf32>
    %173 = arith.addf %170, %172 : vector<16x32xf32>
    %cst_60 = arith.constant dense<0.000000e+00> : vector<16xf32>
    %174 = vector.multi_reduction <add>, %173, %cst_60 [1] : vector<16x32xf32> to vector<16xf32>
    %175 = vector.shape_cast %174 : vector<16xf32> to vector<16x1xf32>
    %cst_61 = arith.constant 3.200000e+01 : f32
    %176 = vector.broadcast %cst_61 : f32 to vector<16x1xf32>
    %177 = arith.divf %175, %176 : vector<16x1xf32>
    %178 = vector.broadcast %177 : vector<16x1xf32> to vector<16x32xf32>
    %179 = arith.subf %173, %178 : vector<16x32xf32>
    %180 = arith.mulf %179, %179 : vector<16x32xf32>
    %cst_62 = arith.constant dense<0.000000e+00> : vector<16xf32>
    %181 = vector.multi_reduction <add>, %180, %cst_62 [1] : vector<16x32xf32> to vector<16xf32>
    %182 = vector.shape_cast %181 : vector<16xf32> to vector<16x1xf32>
    %cst_63 = arith.constant 3.200000e+01 : f32
    %183 = vector.broadcast %cst_63 : f32 to vector<16x1xf32>
    %184 = arith.divf %182, %183 : vector<16x1xf32>
    %185 = vector.broadcast %177 : vector<16x1xf32> to vector<16x32xf32>
    %186 = arith.subf %173, %185 : vector<16x32xf32>
    %cst_64 = arith.constant 9.99999974E-6 : f32
    %187 = vector.broadcast %cst_64 : f32 to vector<16x1xf32>
    %188 = arith.addf %184, %187 : vector<16x1xf32>
    %189 = math.rsqrt %188 : vector<16x1xf32>
    %190 = vector.broadcast %189 : vector<16x1xf32> to vector<16x32xf32>
    %191 = arith.mulf %186, %190 : vector<16x32xf32>
    %192 = vector.extract_strided_slice %6 {offsets = [4, 0], sizes = [1, 32], strides = [1, 1]} : vector<16x64xf32> to vector<1x32xf32>
    %193 = vector.broadcast %192 : vector<1x32xf32> to vector<16x32xf32>
    %194 = arith.mulf %191, %193 : vector<16x32xf32>
    %195 = vector.extract_strided_slice %6 {offsets = [5, 0], sizes = [1, 32], strides = [1, 1]} : vector<16x64xf32> to vector<1x32xf32>
    %196 = vector.broadcast %195 : vector<1x32xf32> to vector<16x32xf32>
    %197 = arith.addf %194, %196 : vector<16x32xf32>
    %198 = arith.addf %197, %103 : vector<16x32xf32>
    %cst_65 = arith.constant 0.000000e+00 : f32
    %199 = vector.broadcast %cst_65 : f32 to vector<16x32xf32>
    %200 = arith.maximumf %198, %199 : vector<16x32xf32>
    %201 = arith.truncf %200 : vector<16x32xf32> to vector<16x32xbf16>
    %c80 = arith.constant 80 : index
    %c0_66 = arith.constant 0 : index
    %202 = vector.load %arg4[%c80, %c0_66] : memref<224x64xbf16, #tpu.memory_space<vmem>>, vector<32x16xbf16>
    %cst_67 = arith.constant dense<0.000000e+00> : vector<16x16xf32>
    %203 = tpu.matmul %201, %202, %cst_67 {dimension_numbers = #tpu.dot_dimension_numbers<[1], [0], [0], [1], [0, 0, 1, 1], [], []>} : vector<16x32xbf16>, vector<32x16xbf16>, vector<16x16xf32> -> vector<16x16xf32>
    %204 = vector.extract_strided_slice %6 {offsets = [9, 0], sizes = [1, 16], strides = [1, 1]} : vector<16x64xf32> to vector<1x16xf32>
    %205 = vector.broadcast %204 : vector<1x16xf32> to vector<16x16xf32>
    %206 = arith.addf %203, %205 : vector<16x16xf32>
    %c48 = arith.constant 48 : index
    %c0_68 = arith.constant 0 : index
    %207 = vector.load %arg4[%c48, %c0_68] : memref<224x64xbf16, #tpu.memory_space<vmem>>, vector<32x32xbf16>
    %cst_69 = arith.constant dense<0.000000e+00> : vector<16x32xf32>
    %208 = tpu.matmul %201, %207, %cst_69 {dimension_numbers = #tpu.dot_dimension_numbers<[1], [0], [0], [1], [0, 0, 1, 1], [], []>} : vector<16x32xbf16>, vector<32x32xbf16>, vector<16x32xf32> -> vector<16x32xf32>
    %209 = arith.truncf %208 : vector<16x32xf32> to vector<16x32xbf16>
    %210 = vector.extract_strided_slice %8 {offsets = [0, 32], sizes = [32, 2], strides = [1, 1]} : vector<64x48xbf16> to vector<32x2xbf16>
    %211 = vector.extract_strided_slice %7 {offsets = [32, 0], sizes = [2, 32], strides = [1, 1]} : vector<48x64xbf16> to vector<2x32xbf16>
    %cst_70 = arith.constant dense<0.000000e+00> : vector<16x2xf32>
    %212 = tpu.matmul %209, %210, %cst_70 {dimension_numbers = #tpu.dot_dimension_numbers<[1], [0], [0], [1], [0, 0, 1, 1], [], []>} : vector<16x32xbf16>, vector<32x2xbf16>, vector<16x2xf32> -> vector<16x2xf32>
    "tpu.trace_start"() <{level = 10 : i32, message = "hc,nc->hn"}> : () -> ()
    %cst_71 = arith.constant dense<0.000000e+00> : vector<2x16xf32>
    %213 = tpu.matmul %211, %209, %cst_71 {dimension_numbers = #tpu.dot_dimension_numbers<[1], [1], [0], [0], [0, 0, 1, 0], [], []>} : vector<2x32xbf16>, vector<16x32xbf16>, vector<2x16xf32> -> vector<2x16xf32>
    %cst_72 = arith.constant 0.000000e+00 : f32
    "tpu.trace_stop"() : () -> ()
    %214 = vector.broadcast %cst_72 : f32 to vector<16x16xf32>
    %215 = vector.extract_strided_slice %212 {offsets = [0, 0], sizes = [16, 1], strides = [1, 1]} : vector<16x2xf32> to vector<16x1xf32>
    %216 = vector.extract_strided_slice %213 {offsets = [0, 0], sizes = [1, 16], strides = [1, 1]} : vector<2x16xf32> to vector<1x16xf32>
    %217 = vector.broadcast %215 : vector<16x1xf32> to vector<16x16xf32>
    %218 = vector.broadcast %216 : vector<1x16xf32> to vector<16x16xf32>
    %219 = arith.addf %217, %218 : vector<16x16xf32>
    %cst_73 = arith.constant 0.000000e+00 : f32
    %220 = vector.broadcast %cst_73 : f32 to vector<16x16xf32>
    %221 = arith.cmpf ogt, %219, %220 : vector<16x16xf32>
    %cst_74 = arith.constant 2.000000e-01 : f32
    %222 = vector.broadcast %cst_74 : f32 to vector<16x16xf32>
    %223 = arith.mulf %222, %219 : vector<16x16xf32>
    %224 = arith.select %221, %219, %223 : vector<16x16xi1>, vector<16x16xf32>
    %cst_75 = arith.constant 0.000000e+00 : bf16
    %225 = vector.broadcast %cst_75 : bf16 to vector<16x16xbf16>
    %226 = arith.cmpf ogt, %3, %225 : vector<16x16xbf16>
    %cst_76 = arith.constant -1.000000e+30 : f32
    %227 = vector.broadcast %cst_76 : f32 to vector<16x16xf32>
    %228 = arith.select %226, %224, %227 : vector<16x16xi1>, vector<16x16xf32>
    %cst_77 = arith.constant dense<0xFF800000> : vector<16xf32>
    %229 = vector.multi_reduction <maximumf>, %228, %cst_77 [1] : vector<16x16xf32> to vector<16xf32>
    %230 = vector.shape_cast %229 : vector<16xf32> to vector<16x1xf32>
    %231 = vector.broadcast %230 : vector<16x1xf32> to vector<16x16xf32>
    %232 = arith.subf %228, %231 : vector<16x16xf32>
    %233 = math.exp %232 : vector<16x16xf32>
    %cst_78 = arith.constant dense<0.000000e+00> : vector<16xf32>
    %234 = vector.multi_reduction <add>, %233, %cst_78 [1] : vector<16x16xf32> to vector<16xf32>
    %235 = vector.shape_cast %234 : vector<16xf32> to vector<16x1xf32>
    %236 = tpu.reciprocal %235 {approx = true} : vector<16x1xf32> -> vector<16x1xf32>
    %237 = vector.broadcast %236 : vector<16x1xf32> to vector<16x16xf32>
    %238 = arith.mulf %233, %237 : vector<16x16xf32>
    %239 = arith.truncf %238 : vector<16x16xf32> to vector<16x16xbf16>
    %240 = vector.extract_strided_slice %209 {offsets = [0, 0], sizes = [16, 16], strides = [1, 1]} : vector<16x32xbf16> to vector<16x16xbf16>
    %cst_79 = arith.constant dense<0.000000e+00> : vector<16x16xf32>
    %241 = tpu.matmul %239, %240, %cst_79 {dimension_numbers = #tpu.dot_dimension_numbers<[1], [0], [0], [1], [0, 0, 1, 1], [], []>} : vector<16x16xbf16>, vector<16x16xbf16>, vector<16x16xf32> -> vector<16x16xf32>
    %242 = arith.addf %214, %241 : vector<16x16xf32>
    %243 = vector.extract_strided_slice %212 {offsets = [0, 1], sizes = [16, 1], strides = [1, 1]} : vector<16x2xf32> to vector<16x1xf32>
    %244 = vector.extract_strided_slice %213 {offsets = [1, 0], sizes = [1, 16], strides = [1, 1]} : vector<2x16xf32> to vector<1x16xf32>
    %245 = vector.broadcast %243 : vector<16x1xf32> to vector<16x16xf32>
    %246 = vector.broadcast %244 : vector<1x16xf32> to vector<16x16xf32>
    %247 = arith.addf %245, %246 : vector<16x16xf32>
    %cst_80 = arith.constant 0.000000e+00 : f32
    %248 = vector.broadcast %cst_80 : f32 to vector<16x16xf32>
    %249 = arith.cmpf ogt, %247, %248 : vector<16x16xf32>
    %cst_81 = arith.constant 2.000000e-01 : f32
    %250 = vector.broadcast %cst_81 : f32 to vector<16x16xf32>
    %251 = arith.mulf %250, %247 : vector<16x16xf32>
    %252 = arith.select %249, %247, %251 : vector<16x16xi1>, vector<16x16xf32>
    %cst_82 = arith.constant 0.000000e+00 : bf16
    %253 = vector.broadcast %cst_82 : bf16 to vector<16x16xbf16>
    %254 = arith.cmpf ogt, %3, %253 : vector<16x16xbf16>
    %cst_83 = arith.constant -1.000000e+30 : f32
    %255 = vector.broadcast %cst_83 : f32 to vector<16x16xf32>
    %256 = arith.select %254, %252, %255 : vector<16x16xi1>, vector<16x16xf32>
    %cst_84 = arith.constant dense<0xFF800000> : vector<16xf32>
    %257 = vector.multi_reduction <maximumf>, %256, %cst_84 [1] : vector<16x16xf32> to vector<16xf32>
    %258 = vector.shape_cast %257 : vector<16xf32> to vector<16x1xf32>
    %259 = vector.broadcast %258 : vector<16x1xf32> to vector<16x16xf32>
    %260 = arith.subf %256, %259 : vector<16x16xf32>
    %261 = math.exp %260 : vector<16x16xf32>
    %cst_85 = arith.constant dense<0.000000e+00> : vector<16xf32>
    %262 = vector.multi_reduction <add>, %261, %cst_85 [1] : vector<16x16xf32> to vector<16xf32>
    %263 = vector.shape_cast %262 : vector<16xf32> to vector<16x1xf32>
    %264 = tpu.reciprocal %263 {approx = true} : vector<16x1xf32> -> vector<16x1xf32>
    %265 = vector.broadcast %264 : vector<16x1xf32> to vector<16x16xf32>
    %266 = arith.mulf %261, %265 : vector<16x16xf32>
    %267 = arith.truncf %266 : vector<16x16xf32> to vector<16x16xbf16>
    %268 = vector.extract_strided_slice %209 {offsets = [0, 16], sizes = [16, 16], strides = [1, 1]} : vector<16x32xbf16> to vector<16x16xbf16>
    %cst_86 = arith.constant dense<0.000000e+00> : vector<16x16xf32>
    %269 = tpu.matmul %267, %268, %cst_86 {dimension_numbers = #tpu.dot_dimension_numbers<[1], [0], [0], [1], [0, 0, 1, 1], [], []>} : vector<16x16xbf16>, vector<16x16xbf16>, vector<16x16xf32> -> vector<16x16xf32>
    %270 = arith.addf %242, %269 : vector<16x16xf32>
    %cst_87 = arith.constant 5.000000e-01 : f32
    %271 = vector.broadcast %cst_87 : f32 to vector<16x16xf32>
    %272 = arith.mulf %270, %271 : vector<16x16xf32>
    %273 = vector.extract_strided_slice %6 {offsets = [6, 0], sizes = [1, 16], strides = [1, 1]} : vector<16x64xf32> to vector<1x16xf32>
    %274 = vector.broadcast %273 : vector<1x16xf32> to vector<16x16xf32>
    %275 = arith.addf %272, %274 : vector<16x16xf32>
    %cst_88 = arith.constant dense<0.000000e+00> : vector<16xf32>
    %276 = vector.multi_reduction <add>, %275, %cst_88 [1] : vector<16x16xf32> to vector<16xf32>
    %277 = vector.shape_cast %276 : vector<16xf32> to vector<16x1xf32>
    %cst_89 = arith.constant 1.600000e+01 : f32
    %278 = vector.broadcast %cst_89 : f32 to vector<16x1xf32>
    %279 = arith.divf %277, %278 : vector<16x1xf32>
    %280 = vector.broadcast %279 : vector<16x1xf32> to vector<16x16xf32>
    %281 = arith.subf %275, %280 : vector<16x16xf32>
    %282 = arith.mulf %281, %281 : vector<16x16xf32>
    %cst_90 = arith.constant dense<0.000000e+00> : vector<16xf32>
    %283 = vector.multi_reduction <add>, %282, %cst_90 [1] : vector<16x16xf32> to vector<16xf32>
    %284 = vector.shape_cast %283 : vector<16xf32> to vector<16x1xf32>
    %cst_91 = arith.constant 1.600000e+01 : f32
    %285 = vector.broadcast %cst_91 : f32 to vector<16x1xf32>
    %286 = arith.divf %284, %285 : vector<16x1xf32>
    %287 = vector.broadcast %279 : vector<16x1xf32> to vector<16x16xf32>
    %288 = arith.subf %275, %287 : vector<16x16xf32>
    %cst_92 = arith.constant 9.99999974E-6 : f32
    %289 = vector.broadcast %cst_92 : f32 to vector<16x1xf32>
    %290 = arith.addf %286, %289 : vector<16x1xf32>
    %291 = math.rsqrt %290 : vector<16x1xf32>
    %292 = vector.broadcast %291 : vector<16x1xf32> to vector<16x16xf32>
    %293 = arith.mulf %288, %292 : vector<16x16xf32>
    %294 = vector.extract_strided_slice %6 {offsets = [7, 0], sizes = [1, 16], strides = [1, 1]} : vector<16x64xf32> to vector<1x16xf32>
    %295 = vector.broadcast %294 : vector<1x16xf32> to vector<16x16xf32>
    %296 = arith.mulf %293, %295 : vector<16x16xf32>
    %297 = vector.extract_strided_slice %6 {offsets = [8, 0], sizes = [1, 16], strides = [1, 1]} : vector<16x64xf32> to vector<1x16xf32>
    %298 = vector.broadcast %297 : vector<1x16xf32> to vector<16x16xf32>
    %299 = arith.addf %296, %298 : vector<16x16xf32>
    %300 = arith.addf %299, %206 : vector<16x16xf32>
    %cst_93 = arith.constant 0.000000e+00 : f32
    %301 = vector.broadcast %cst_93 : f32 to vector<16x16xf32>
    %302 = arith.maximumf %300, %301 : vector<16x16xf32>
    %303 = arith.truncf %302 : vector<16x16xf32> to vector<16x16xbf16>
    %c112 = arith.constant 112 : index
    %c0_94 = arith.constant 0 : index
    %304 = vector.load %arg4[%c112, %c0_94] : memref<224x64xbf16, #tpu.memory_space<vmem>>, vector<32x64xbf16>
    %305 = vector.extract_strided_slice %6 {offsets = [10, 0], sizes = [1, 64], strides = [1, 1]} : vector<16x64xf32> to vector<1x64xf32>
    %cst_95 = arith.constant 0.000000e+00 : f32
    %306 = vector.broadcast %cst_95 : f32 to vector<2x16xf32>
    %cst_96 = arith.constant 0.000000e+00 : f32
    %307 = vector.broadcast %cst_96 : f32 to vector<2x32xf32>
    %308 = arith.truncf %307 : vector<2x32xf32> to vector<2x32xbf16>
    %cst_97 = arith.constant dense<0.000000e+00> : vector<2x64xf32>
    %309 = tpu.matmul %308, %304, %cst_97 {dimension_numbers = #tpu.dot_dimension_numbers<[1], [0], [0], [1], [0, 0, 1, 1], [], []>} : vector<2x32xbf16>, vector<32x64xbf16>, vector<2x64xf32> -> vector<2x64xf32>
    %310 = vector.broadcast %305 : vector<1x64xf32> to vector<2x64xf32>
    %311 = arith.addf %309, %310 : vector<2x64xf32>
    %312 = vector.extract_strided_slice %311 {offsets = [0, 0], sizes = [2, 16], strides = [1, 1]} : vector<2x64xf32> to vector<2x16xf32>
    %313 = arith.negf %312 : vector<2x16xf32>
    %314 = math.exp %313 : vector<2x16xf32>
    %cst_98 = arith.constant 1.000000e+00 : f32
    %315 = vector.broadcast %cst_98 : f32 to vector<2x16xf32>
    %316 = arith.addf %315, %314 : vector<2x16xf32>
    %317 = arith.divf %315, %316 : vector<2x16xf32>
    %318 = vector.extract_strided_slice %311 {offsets = [0, 16], sizes = [2, 16], strides = [1, 1]} : vector<2x64xf32> to vector<2x16xf32>
    %319 = arith.negf %318 : vector<2x16xf32>
    %320 = math.exp %319 : vector<2x16xf32>
    %cst_99 = arith.constant 1.000000e+00 : f32
    %321 = vector.broadcast %cst_99 : f32 to vector<2x16xf32>
    %322 = arith.addf %321, %320 : vector<2x16xf32>
    %323 = arith.divf %321, %322 : vector<2x16xf32>
    %324 = vector.extract_strided_slice %311 {offsets = [0, 32], sizes = [2, 16], strides = [1, 1]} : vector<2x64xf32> to vector<2x16xf32>
    %325 = math.tanh %324 : vector<2x16xf32>
    %326 = vector.extract_strided_slice %311 {offsets = [0, 48], sizes = [2, 16], strides = [1, 1]} : vector<2x64xf32> to vector<2x16xf32>
    %327 = arith.negf %326 : vector<2x16xf32>
    %328 = math.exp %327 : vector<2x16xf32>
    %cst_100 = arith.constant 1.000000e+00 : f32
    %329 = vector.broadcast %cst_100 : f32 to vector<2x16xf32>
    %330 = arith.addf %329, %328 : vector<2x16xf32>
    %331 = arith.divf %329, %330 : vector<2x16xf32>
    %332 = arith.mulf %323, %306 : vector<2x16xf32>
    %333 = arith.mulf %317, %325 : vector<2x16xf32>
    %334 = arith.addf %332, %333 : vector<2x16xf32>
    %335 = math.tanh %334 : vector<2x16xf32>
    %336 = arith.mulf %331, %335 : vector<2x16xf32>
    %337 = arith.truncf %336 : vector<2x16xf32> to vector<2x16xbf16>
    "tpu.trace_start"() <{level = 10 : i32, message = "bd,nd->bn"}> : () -> ()
    %cst_101 = arith.constant dense<0.000000e+00> : vector<2x16xf32>
    %338 = tpu.matmul %337, %303, %cst_101 {dimension_numbers = #tpu.dot_dimension_numbers<[1], [1], [0], [0], [0, 0, 1, 0], [], []>} : vector<2x16xbf16>, vector<16x16xbf16>, vector<2x16xf32> -> vector<2x16xf32>
    %cst_102 = arith.constant 0.000000e+00 : bf16
    "tpu.trace_stop"() : () -> ()
    %339 = vector.broadcast %cst_102 : bf16 to vector<2x16xbf16>
    %340 = arith.cmpf ogt, %5, %339 : vector<2x16xbf16>
    %cst_103 = arith.constant -1.000000e+30 : f32
    %341 = vector.broadcast %cst_103 : f32 to vector<2x16xf32>
    %342 = arith.select %340, %338, %341 : vector<2x16xi1>, vector<2x16xf32>
    %cst_104 = arith.constant dense<0xFF800000> : vector<2xf32>
    %343 = vector.multi_reduction <maximumf>, %342, %cst_104 [1] : vector<2x16xf32> to vector<2xf32>
    %344 = vector.shape_cast %343 : vector<2xf32> to vector<2x1xf32>
    %345 = vector.broadcast %344 : vector<2x1xf32> to vector<2x16xf32>
    %346 = arith.subf %342, %345 : vector<2x16xf32>
    %347 = math.exp %346 : vector<2x16xf32>
    %cst_105 = arith.constant dense<0.000000e+00> : vector<2xf32>
    %348 = vector.multi_reduction <add>, %347, %cst_105 [1] : vector<2x16xf32> to vector<2xf32>
    %349 = vector.shape_cast %348 : vector<2xf32> to vector<2x1xf32>
    %350 = vector.broadcast %349 : vector<2x1xf32> to vector<2x16xf32>
    %351 = arith.divf %347, %350 : vector<2x16xf32>
    %352 = arith.truncf %351 : vector<2x16xf32> to vector<2x16xbf16>
    %cst_106 = arith.constant dense<0.000000e+00> : vector<2x16xf32>
    %353 = tpu.matmul %352, %303, %cst_106 {dimension_numbers = #tpu.dot_dimension_numbers<[1], [0], [0], [1], [0, 0, 1, 1], [], []>} : vector<2x16xbf16>, vector<16x16xbf16>, vector<2x16xf32> -> vector<2x16xf32>
    %354 = tpu.concatenate %336, %353 in 1 : vector<2x16xf32>, vector<2x16xf32> -> vector<2x32xf32>
    %355 = arith.truncf %354 : vector<2x32xf32> to vector<2x32xbf16>
    %cst_107 = arith.constant dense<0.000000e+00> : vector<2x64xf32>
    %356 = tpu.matmul %355, %304, %cst_107 {dimension_numbers = #tpu.dot_dimension_numbers<[1], [0], [0], [1], [0, 0, 1, 1], [], []>} : vector<2x32xbf16>, vector<32x64xbf16>, vector<2x64xf32> -> vector<2x64xf32>
    %357 = vector.broadcast %305 : vector<1x64xf32> to vector<2x64xf32>
    %358 = arith.addf %356, %357 : vector<2x64xf32>
    %359 = vector.extract_strided_slice %358 {offsets = [0, 0], sizes = [2, 16], strides = [1, 1]} : vector<2x64xf32> to vector<2x16xf32>
    %360 = arith.negf %359 : vector<2x16xf32>
    %361 = math.exp %360 : vector<2x16xf32>
    %cst_108 = arith.constant 1.000000e+00 : f32
    %362 = vector.broadcast %cst_108 : f32 to vector<2x16xf32>
    %363 = arith.addf %362, %361 : vector<2x16xf32>
    %364 = arith.divf %362, %363 : vector<2x16xf32>
    %365 = vector.extract_strided_slice %358 {offsets = [0, 16], sizes = [2, 16], strides = [1, 1]} : vector<2x64xf32> to vector<2x16xf32>
    %366 = arith.negf %365 : vector<2x16xf32>
    %367 = math.exp %366 : vector<2x16xf32>
    %cst_109 = arith.constant 1.000000e+00 : f32
    %368 = vector.broadcast %cst_109 : f32 to vector<2x16xf32>
    %369 = arith.addf %368, %367 : vector<2x16xf32>
    %370 = arith.divf %368, %369 : vector<2x16xf32>
    %371 = vector.extract_strided_slice %358 {offsets = [0, 32], sizes = [2, 16], strides = [1, 1]} : vector<2x64xf32> to vector<2x16xf32>
    %372 = math.tanh %371 : vector<2x16xf32>
    %373 = vector.extract_strided_slice %358 {offsets = [0, 48], sizes = [2, 16], strides = [1, 1]} : vector<2x64xf32> to vector<2x16xf32>
    %374 = arith.negf %373 : vector<2x16xf32>
    %375 = math.exp %374 : vector<2x16xf32>
    %cst_110 = arith.constant 1.000000e+00 : f32
    %376 = vector.broadcast %cst_110 : f32 to vector<2x16xf32>
    %377 = arith.addf %376, %375 : vector<2x16xf32>
    %378 = arith.divf %376, %377 : vector<2x16xf32>
    %379 = arith.mulf %370, %334 : vector<2x16xf32>
    %380 = arith.mulf %364, %372 : vector<2x16xf32>
    %381 = arith.addf %379, %380 : vector<2x16xf32>
    %382 = math.tanh %381 : vector<2x16xf32>
    %383 = arith.mulf %378, %382 : vector<2x16xf32>
    %384 = arith.truncf %383 : vector<2x16xf32> to vector<2x16xbf16>
    "tpu.trace_start"() <{level = 10 : i32, message = "bd,nd->bn"}> : () -> ()
    %cst_111 = arith.constant dense<0.000000e+00> : vector<2x16xf32>
    %385 = tpu.matmul %384, %303, %cst_111 {dimension_numbers = #tpu.dot_dimension_numbers<[1], [1], [0], [0], [0, 0, 1, 0], [], []>} : vector<2x16xbf16>, vector<16x16xbf16>, vector<2x16xf32> -> vector<2x16xf32>
    %cst_112 = arith.constant 0.000000e+00 : bf16
    "tpu.trace_stop"() : () -> ()
    %386 = vector.broadcast %cst_112 : bf16 to vector<2x16xbf16>
    %387 = arith.cmpf ogt, %5, %386 : vector<2x16xbf16>
    %cst_113 = arith.constant -1.000000e+30 : f32
    %388 = vector.broadcast %cst_113 : f32 to vector<2x16xf32>
    %389 = arith.select %387, %385, %388 : vector<2x16xi1>, vector<2x16xf32>
    %cst_114 = arith.constant dense<0xFF800000> : vector<2xf32>
    %390 = vector.multi_reduction <maximumf>, %389, %cst_114 [1] : vector<2x16xf32> to vector<2xf32>
    %391 = vector.shape_cast %390 : vector<2xf32> to vector<2x1xf32>
    %392 = vector.broadcast %391 : vector<2x1xf32> to vector<2x16xf32>
    %393 = arith.subf %389, %392 : vector<2x16xf32>
    %394 = math.exp %393 : vector<2x16xf32>
    %cst_115 = arith.constant dense<0.000000e+00> : vector<2xf32>
    %395 = vector.multi_reduction <add>, %394, %cst_115 [1] : vector<2x16xf32> to vector<2xf32>
    %396 = vector.shape_cast %395 : vector<2xf32> to vector<2x1xf32>
    %397 = vector.broadcast %396 : vector<2x1xf32> to vector<2x16xf32>
    %398 = arith.divf %394, %397 : vector<2x16xf32>
    %399 = arith.truncf %398 : vector<2x16xf32> to vector<2x16xbf16>
    %cst_116 = arith.constant dense<0.000000e+00> : vector<2x16xf32>
    %400 = tpu.matmul %399, %303, %cst_116 {dimension_numbers = #tpu.dot_dimension_numbers<[1], [0], [0], [1], [0, 0, 1, 1], [], []>} : vector<2x16xbf16>, vector<16x16xbf16>, vector<2x16xf32> -> vector<2x16xf32>
    %401 = tpu.concatenate %383, %400 in 1 : vector<2x16xf32>, vector<2x16xf32> -> vector<2x32xf32>
    %402 = arith.truncf %401 : vector<2x32xf32> to vector<2x32xbf16>
    %cst_117 = arith.constant dense<0.000000e+00> : vector<2x64xf32>
    %403 = tpu.matmul %402, %304, %cst_117 {dimension_numbers = #tpu.dot_dimension_numbers<[1], [0], [0], [1], [0, 0, 1, 1], [], []>} : vector<2x32xbf16>, vector<32x64xbf16>, vector<2x64xf32> -> vector<2x64xf32>
    %404 = vector.broadcast %305 : vector<1x64xf32> to vector<2x64xf32>
    %405 = arith.addf %403, %404 : vector<2x64xf32>
    %406 = vector.extract_strided_slice %405 {offsets = [0, 0], sizes = [2, 16], strides = [1, 1]} : vector<2x64xf32> to vector<2x16xf32>
    %407 = arith.negf %406 : vector<2x16xf32>
    %408 = math.exp %407 : vector<2x16xf32>
    %cst_118 = arith.constant 1.000000e+00 : f32
    %409 = vector.broadcast %cst_118 : f32 to vector<2x16xf32>
    %410 = arith.addf %409, %408 : vector<2x16xf32>
    %411 = arith.divf %409, %410 : vector<2x16xf32>
    %412 = vector.extract_strided_slice %405 {offsets = [0, 16], sizes = [2, 16], strides = [1, 1]} : vector<2x64xf32> to vector<2x16xf32>
    %413 = arith.negf %412 : vector<2x16xf32>
    %414 = math.exp %413 : vector<2x16xf32>
    %cst_119 = arith.constant 1.000000e+00 : f32
    %415 = vector.broadcast %cst_119 : f32 to vector<2x16xf32>
    %416 = arith.addf %415, %414 : vector<2x16xf32>
    %417 = arith.divf %415, %416 : vector<2x16xf32>
    %418 = vector.extract_strided_slice %405 {offsets = [0, 32], sizes = [2, 16], strides = [1, 1]} : vector<2x64xf32> to vector<2x16xf32>
    %419 = math.tanh %418 : vector<2x16xf32>
    %420 = vector.extract_strided_slice %405 {offsets = [0, 48], sizes = [2, 16], strides = [1, 1]} : vector<2x64xf32> to vector<2x16xf32>
    %421 = arith.negf %420 : vector<2x16xf32>
    %422 = math.exp %421 : vector<2x16xf32>
    %cst_120 = arith.constant 1.000000e+00 : f32
    %423 = vector.broadcast %cst_120 : f32 to vector<2x16xf32>
    %424 = arith.addf %423, %422 : vector<2x16xf32>
    %425 = arith.divf %423, %424 : vector<2x16xf32>
    %426 = arith.mulf %417, %381 : vector<2x16xf32>
    %427 = arith.mulf %411, %419 : vector<2x16xf32>
    %428 = arith.addf %426, %427 : vector<2x16xf32>
    %429 = math.tanh %428 : vector<2x16xf32>
    %430 = arith.mulf %425, %429 : vector<2x16xf32>
    %431 = arith.truncf %430 : vector<2x16xf32> to vector<2x16xbf16>
    "tpu.trace_start"() <{level = 10 : i32, message = "bd,nd->bn"}> : () -> ()
    %cst_121 = arith.constant dense<0.000000e+00> : vector<2x16xf32>
    %432 = tpu.matmul %431, %303, %cst_121 {dimension_numbers = #tpu.dot_dimension_numbers<[1], [1], [0], [0], [0, 0, 1, 0], [], []>} : vector<2x16xbf16>, vector<16x16xbf16>, vector<2x16xf32> -> vector<2x16xf32>
    %cst_122 = arith.constant 0.000000e+00 : bf16
    "tpu.trace_stop"() : () -> ()
    %433 = vector.broadcast %cst_122 : bf16 to vector<2x16xbf16>
    %434 = arith.cmpf ogt, %5, %433 : vector<2x16xbf16>
    %cst_123 = arith.constant -1.000000e+30 : f32
    %435 = vector.broadcast %cst_123 : f32 to vector<2x16xf32>
    %436 = arith.select %434, %432, %435 : vector<2x16xi1>, vector<2x16xf32>
    %cst_124 = arith.constant dense<0xFF800000> : vector<2xf32>
    %437 = vector.multi_reduction <maximumf>, %436, %cst_124 [1] : vector<2x16xf32> to vector<2xf32>
    %438 = vector.shape_cast %437 : vector<2xf32> to vector<2x1xf32>
    %439 = vector.broadcast %438 : vector<2x1xf32> to vector<2x16xf32>
    %440 = arith.subf %436, %439 : vector<2x16xf32>
    %441 = math.exp %440 : vector<2x16xf32>
    %cst_125 = arith.constant dense<0.000000e+00> : vector<2xf32>
    %442 = vector.multi_reduction <add>, %441, %cst_125 [1] : vector<2x16xf32> to vector<2xf32>
    %443 = vector.shape_cast %442 : vector<2xf32> to vector<2x1xf32>
    %444 = vector.broadcast %443 : vector<2x1xf32> to vector<2x16xf32>
    %445 = arith.divf %441, %444 : vector<2x16xf32>
    %446 = arith.truncf %445 : vector<2x16xf32> to vector<2x16xbf16>
    %cst_126 = arith.constant dense<0.000000e+00> : vector<2x16xf32>
    %447 = tpu.matmul %446, %303, %cst_126 {dimension_numbers = #tpu.dot_dimension_numbers<[1], [0], [0], [1], [0, 0, 1, 1], [], []>} : vector<2x16xbf16>, vector<16x16xbf16>, vector<2x16xf32> -> vector<2x16xf32>
    %448 = tpu.concatenate %430, %447 in 1 : vector<2x16xf32>, vector<2x16xf32> -> vector<2x32xf32>
    %449 = arith.truncf %448 : vector<2x32xf32> to vector<2x32xbf16>
    %c144 = arith.constant 144 : index
    %c0_127 = arith.constant 0 : index
    %450 = vector.load %arg4[%c144, %c0_127] : memref<224x64xbf16, #tpu.memory_space<vmem>>, vector<32x32xbf16>
    %cst_128 = arith.constant dense<0.000000e+00> : vector<2x32xf32>
    %451 = tpu.matmul %449, %450, %cst_128 {dimension_numbers = #tpu.dot_dimension_numbers<[1], [0], [0], [1], [0, 0, 1, 1], [], []>} : vector<2x32xbf16>, vector<32x32xbf16>, vector<2x32xf32> -> vector<2x32xf32>
    %452 = vector.extract_strided_slice %6 {offsets = [11, 0], sizes = [1, 32], strides = [1, 1]} : vector<16x64xf32> to vector<1x32xf32>
    %453 = vector.broadcast %452 : vector<1x32xf32> to vector<2x32xf32>
    %454 = arith.addf %451, %453 : vector<2x32xf32>
    %cst_129 = arith.constant 0.000000e+00 : f32
    %455 = vector.broadcast %cst_129 : f32 to vector<2x32xf32>
    %456 = arith.maximumf %454, %455 : vector<2x32xf32>
    %cst_130 = arith.constant dense<0.000000e+00> : vector<2xf32>
    %457 = vector.multi_reduction <add>, %456, %cst_130 [1] : vector<2x32xf32> to vector<2xf32>
    %458 = vector.shape_cast %457 : vector<2xf32> to vector<2x1xf32>
    %cst_131 = arith.constant 3.200000e+01 : f32
    %459 = vector.broadcast %cst_131 : f32 to vector<2x1xf32>
    %460 = arith.divf %458, %459 : vector<2x1xf32>
    %461 = vector.broadcast %460 : vector<2x1xf32> to vector<2x32xf32>
    %462 = arith.subf %456, %461 : vector<2x32xf32>
    %463 = arith.mulf %462, %462 : vector<2x32xf32>
    %cst_132 = arith.constant dense<0.000000e+00> : vector<2xf32>
    %464 = vector.multi_reduction <add>, %463, %cst_132 [1] : vector<2x32xf32> to vector<2xf32>
    %465 = vector.shape_cast %464 : vector<2xf32> to vector<2x1xf32>
    %cst_133 = arith.constant 3.200000e+01 : f32
    %466 = vector.broadcast %cst_133 : f32 to vector<2x1xf32>
    %467 = arith.divf %465, %466 : vector<2x1xf32>
    %468 = vector.broadcast %460 : vector<2x1xf32> to vector<2x32xf32>
    %469 = arith.subf %456, %468 : vector<2x32xf32>
    %cst_134 = arith.constant 9.99999974E-6 : f32
    %470 = vector.broadcast %cst_134 : f32 to vector<2x1xf32>
    %471 = arith.addf %467, %470 : vector<2x1xf32>
    %472 = math.rsqrt %471 : vector<2x1xf32>
    %473 = vector.broadcast %472 : vector<2x1xf32> to vector<2x32xf32>
    %474 = arith.mulf %469, %473 : vector<2x32xf32>
    %475 = vector.extract_strided_slice %6 {offsets = [12, 0], sizes = [1, 32], strides = [1, 1]} : vector<16x64xf32> to vector<1x32xf32>
    %476 = vector.broadcast %475 : vector<1x32xf32> to vector<2x32xf32>
    %477 = arith.mulf %474, %476 : vector<2x32xf32>
    %478 = vector.extract_strided_slice %6 {offsets = [13, 0], sizes = [1, 32], strides = [1, 1]} : vector<16x64xf32> to vector<1x32xf32>
    %479 = vector.broadcast %478 : vector<1x32xf32> to vector<2x32xf32>
    %480 = arith.addf %477, %479 : vector<2x32xf32>
    %481 = arith.truncf %480 : vector<2x32xf32> to vector<2x32xbf16>
    %c176 = arith.constant 176 : index
    %c0_135 = arith.constant 0 : index
    %482 = vector.load %arg4[%c176, %c0_135] : memref<224x64xbf16, #tpu.memory_space<vmem>>, vector<32x16xbf16>
    %cst_136 = arith.constant dense<0.000000e+00> : vector<2x16xf32>
    %483 = tpu.matmul %481, %482, %cst_136 {dimension_numbers = #tpu.dot_dimension_numbers<[1], [0], [0], [1], [0, 0, 1, 1], [], []>} : vector<2x32xbf16>, vector<32x16xbf16>, vector<2x16xf32> -> vector<2x16xf32>
    %484 = vector.extract_strided_slice %6 {offsets = [14, 0], sizes = [1, 16], strides = [1, 1]} : vector<16x64xf32> to vector<1x16xf32>
    %485 = vector.broadcast %484 : vector<1x16xf32> to vector<2x16xf32>
    %486 = arith.addf %483, %485 : vector<2x16xf32>
    %cst_137 = arith.constant 0.000000e+00 : f32
    %487 = vector.broadcast %cst_137 : f32 to vector<2x16xf32>
    %488 = arith.maximumf %486, %487 : vector<2x16xf32>
    %489 = arith.truncf %488 : vector<2x16xf32> to vector<2x16xbf16>
    %c208 = arith.constant 208 : index
    %c0_138 = arith.constant 0 : index
    %490 = vector.load %arg4[%c208, %c0_138] : memref<224x64xbf16, #tpu.memory_space<vmem>>, vector<16x5xbf16>
    %cst_139 = arith.constant dense<0.000000e+00> : vector<2x5xf32>
    %491 = tpu.matmul %489, %490, %cst_139 {dimension_numbers = #tpu.dot_dimension_numbers<[1], [0], [0], [1], [0, 0, 1, 1], [], []>} : vector<2x16xbf16>, vector<16x5xbf16>, vector<2x5xf32> -> vector<2x5xf32>
    %492 = vector.extract_strided_slice %6 {offsets = [15, 0], sizes = [1, 5], strides = [1, 1]} : vector<16x64xf32> to vector<1x5xf32>
    %493 = vector.broadcast %492 : vector<1x5xf32> to vector<2x5xf32>
    %494 = arith.addf %491, %493 : vector<2x5xf32>
    %cst_140 = arith.constant dense<0xFF800000> : vector<2xf32>
    %495 = vector.multi_reduction <maximumf>, %494, %cst_140 [1] : vector<2x5xf32> to vector<2xf32>
    %496 = vector.shape_cast %495 : vector<2xf32> to vector<2x1xf32>
    %497 = vector.broadcast %496 : vector<2x1xf32> to vector<2x5xf32>
    %498 = arith.subf %494, %497 : vector<2x5xf32>
    %499 = math.exp %498 : vector<2x5xf32>
    %cst_141 = arith.constant dense<0.000000e+00> : vector<2xf32>
    %500 = vector.multi_reduction <add>, %499, %cst_141 [1] : vector<2x5xf32> to vector<2xf32>
    %501 = vector.shape_cast %500 : vector<2xf32> to vector<2x1xf32>
    %502 = math.log %501 : vector<2x1xf32>
    %503 = vector.broadcast %502 : vector<2x1xf32> to vector<2x5xf32>
    %504 = arith.subf %498, %503 : vector<2x5xf32>
    %c0_142 = arith.constant 0 : index
    %c0_143 = arith.constant 0 : index
    %c0_144 = arith.constant 0 : index
    %505 = vector.load %arg8[%c0_142, %c0_143, %c0_144] : memref<1x2x5xf32, #tpu.memory_space<vmem>>, vector<1x2x5xf32>
    %506 = vector.shape_cast %505 : vector<1x2x5xf32> to vector<2x5xf32>
    %507 = vector.shape_cast %504 : vector<2x5xf32> to vector<1x2x5xf32>
    tpu.vector_store %arg8[%c0_142, %c0_143, %c0_144], %507 {strides = array<i32>} : memref<1x2x5xf32, #tpu.memory_space<vmem>>, vector<1x2x5xf32>,
    return
  }
  func.func @transform_0(%arg0: i32) -> (i32, i32, i32) {
    %c0_i32 = arith.constant 0 : i32
    %c0_i32_0 = arith.constant 0 : i32
    %c0_i32_1 = arith.constant 0 : i32
    return %arg0, %c0_i32, %c0_i32_0 : i32, i32, i32
  }
  func.func @transform_1(%arg0: i32) -> (i32, i32, i32) {
    %c0_i32 = arith.constant 0 : i32
    %c0_i32_0 = arith.constant 0 : i32
    %c0_i32_1 = arith.constant 0 : i32
    return %arg0, %c0_i32, %c0_i32_0 : i32, i32, i32
  }
  func.func @transform_2(%arg0: i32) -> (i32, i32, i32) {
    %c0_i32 = arith.constant 0 : i32
    %c0_i32_0 = arith.constant 0 : i32
    %c0_i32_1 = arith.constant 0 : i32
    return %arg0, %c0_i32, %c0_i32_0 : i32, i32, i32
  }
  func.func @transform_3(%arg0: i32) -> (i32, i32) {
    %c0_i32 = arith.constant 0 : i32
    %c0_i32_0 = arith.constant 0 : i32
    %c0_i32_1 = arith.constant 0 : i32
    return %c0_i32, %c0_i32_0 : i32, i32
  }
  func.func @transform_4(%arg0: i32) -> (i32, i32) {
    %c0_i32 = arith.constant 0 : i32
    %c0_i32_0 = arith.constant 0 : i32
    %c0_i32_1 = arith.constant 0 : i32
    return %c0_i32, %c0_i32_0 : i32, i32
  }
  func.func @transform_5(%arg0: i32) -> (i32, i32) {
    %c0_i32 = arith.constant 0 : i32
    %c0_i32_0 = arith.constant 0 : i32
    %c0_i32_1 = arith.constant 0 : i32
    return %c0_i32, %c0_i32_0 : i32, i32
  }
  func.func @transform_6(%arg0: i32) -> (i32, i32) {
    %c0_i32 = arith.constant 0 : i32
    %c0_i32_0 = arith.constant 0 : i32
    %c0_i32_1 = arith.constant 0 : i32
    return %c0_i32, %c0_i32_0 : i32, i32
  }
  func.func @transform_7(%arg0: i32) -> (i32, i32, i32) {
    %c0_i32 = arith.constant 0 : i32
    %c0_i32_0 = arith.constant 0 : i32
    %c0_i32_1 = arith.constant 0 : i32
    return %arg0, %c0_i32, %c0_i32_0 : i32, i32, i32
  }
}

</mosaic_0001>

<bundles_post_ra>
// kernel: forward.1
= control target key start
LH: loop header
LB: loop body
LE: loop exit
PB: predicated region body
PF: predicated region fallthrough
CT: control target
= control target key end

     0   :  { %12 = vsyncpa [#allocation3], 0  ;;  %s3713_s0 = inlined_call_operand.vmem [shape: bf16[4,16,16], index: 0, kind: input, shape index: {}]   ;;  %s3714_s1 = inlined_call_operand.vmem [shape: bf16[4,16,16], index: 1, kind: input, shape index: {}]   ;;  %s3715_s2 = inlined_call_operand.vmem [shape: bf16[4,2,16], index: 2, kind: input, shape index: {}]   ;;  %s3716_s3 = inlined_call_operand.vmem [shape: bf16[224,64], index: 3, kind: input, shape index: {}]   ;;  %s3717_s4 = inlined_call_operand.vmem [shape: f32[16,64], index: 4, kind: input, shape index: {}]   ;;  %s3718_s5 = inlined_call_operand.vmem [shape: bf16[48,64], index: 5, kind: input, shape index: {}]   ;;  %s3719_s6 = inlined_call_operand.vmem [shape: bf16[64,48], index: 6, kind: input, shape index: {}]   ;;  %s3720_s7 = inlined_call_operand.hbm [shape: f32[4,2,5], index: 7, kind: output, shape index: {}]  }
   0x1   :  { %14 = vsyncpa [#allocation3 + $0x1], 0  ;;  %s3113_s24 = smov 0   ;;  %s3115_s25 = smov 0  }
   0x2   :  { %s3117_s26 = smov 0   ;;  %s3119_s27 = smov 0  }
   0x3 LB: > { %s3134_s28 = sadd.s32 4294967295, %s3061_s27   ;;  %s2477_s29 = sadd.s32 4294967294, %s3061_s27   ;;  %s3061_s27 = sphi %s3119_s27, %s3732_s27   ;;  %s3057_s26 = sphi %s3117_s26, %s3731_s26   ;;  %s3053_s25 = sphi %s3115_s25, %s3730_s25   ;;  %s3049_s24 = sphi %s3113_s24, %s3729_s24  }
   0x4   : > { %s3138_s30 = sadd.s32 1, %s3061_s27   ;;  %s189_s8 = sadd.s32 1, %s3057_s26 }
   0x5   : > { %s186_s9 = ssub.s32 %s3061_s27, %s3138_s30  ;;  %p199_p0 = scmp.ne.s32.totalorder %s3057_s26, %s3053_s25 }
   0x6   : > { %p187_p1 = scmp.eq.s32.totalorder %s186_s9, 0  ;;  %p200_p2 = scmp.eq.s32.totalorder %s3134_s28, 3 }
   0x7   : > { %p205_p3 = scmp.ne.s32.totalorder %s3053_s25, %s3049_s24  ;;  %p206_p4 = scmp.eq.s32.totalorder %s2477_s29, 3 }
   0x8   : > { %s3149_s10 = scalar_select %p187_p1, %s3057_s26, %s189_s8  }
   0x9   : > { %p3151_p5 = por %p200_p2, %p199_p0  ;;  %p3155_p6 = por %p206_p4, %p205_p3 }
   0xa   : > { %p2480_p7 = scmp.ge.s32.totalorder %s3061_s27, 1  ;;  %p258_p8 = scmp.lt.s32.totalorder %s3061_s27, 5 }
   0xc   : > { %p259_p9 = pnand %p2480_p7, %p258_p8 }
   0xd   : > { %v2878_v0 = vld [vmem:[%s3716_s3] sm:$0xff] (!%p259_p9)   ;;  %v3063_v1 = vmov (!%p259_p9), 0.0   ;;  %p298_p10 = scmp.lt.s32.totalorder (!%p259_p9), %s3134_s28, 3  ;;  %vm3064_vm0 = vmmov (!%p259_p9), 0   ;;  %v3181_v3 = vld [vmem:[%s3719_s6 + $0x8] sm:$0xff] (!%p259_p9)   ;;  %vm345_vm1 = vcmask (!%p259_p9), 130048   ;;  %v513_v24 = vlaneseq (!%p259_p9) }
   0xe   : > { %262 = sbr.rel (%p259_p9) target bundleno = 9617 (0x2591), region = 48  ;;  %2612 = vmatprep.subr.bf16.mxu0 (!%p259_p9), %v3063_v1  ;;  %2618 = vmatprep.subr.bf16.mxu1 (!%p259_p9), %v3063_v1  ;;  %v3170_v2 = vld [vmem:[%s3719_s6] sm:$0xff] (!%p259_p9)   ;;  %v3191_v4 = vld [vmem:[%s3719_s6 + $0x10] sm:$0xff] (!%p259_p9)   ;;  %v3208_v6 = vld [vmem:[%s3719_s6 + $0x18] sm:$0xff] (!%p259_p9)   ;;  %v3065_v7 = vmov (!%p259_p9), 1   ;;  %v3066_v8 = vmov (!%p259_p9), 0  }
   0xf   : > { %2613 = vmatpush3.bf16.msra.mxu0 (!%p259_p9), %v2878_v0  ;;  %2614 = vmatprep.mubr.msk.bf16.mxu0 (!%p259_p9), %vm3064_vm0, %v3063_v1  ;;  %vm415_vm2 = vcmask (!%p259_p9), 523264   ;;  %v321_v15 = vld [vmem:[%s3718_s5] sm:$0xf] (!%p259_p9)  ;;  %v3236_v25 = vshrl.u32 (!%p259_p9), %v513_v24, 7  ;;  %vm703_vm11 = vcmask (!%p259_p9), 261120   ;;  %s3068_s13 = smov (!%p259_p9), 112  }
  0x10   : > { %2619 = vmatpush3.bf16.msra.mxu1 (!%p259_p9), %v3170_v2  ;;  %2626 = vmatprep.mubr.msk.bf16.mxu1 (!%p259_p9), %vm3064_vm0, %v3063_v1  ;;  %s3070_s23 = smov (!%p259_p9), 32   ;;  %s3071_s29 = smov (!%p259_p9), 80  }
  0x11   : > { %2620 = vmatprep.subr.bf16.mxu1 (!%p259_p9), %v3063_v1  ;;  %2630 = vmatprep.subr.bf16.mxu0 (!%p259_p9), %v3063_v1  ;;  %v3239_v27 = vsub.s32 (!%p259_p9), 0, %v3236_v25  ;;  %v3242_v28 = vsub.s32 (!%p259_p9), 1, %v3236_v25  ;;  %s2536_s9 = sshll.u32 (!%p259_p9), %s3134_s28, 5 }
  0x12   : > { %2870 = vset.pattern.permute.xlu0 (!%p259_p9), %v3065_v7  ;;  %2871 = vset.pattern.permute.xlu1 (!%p259_p9), %v3066_v8  ;;  %s3670_s16 = scalar_lea.hbm (!%p259_p9), %s3720_s7, %s2536_s9 }
  0x14   : > { %2621 = vmatpush3.bf16.msra.mxu1 (!%p259_p9), %v3181_v3 }
  0x15   : > { %s3175_s17 = scalar_select %p298_p10, %s3134_s28, 3  ;;  %2622 = vmatprep.subr.bf16.mxu1 %v3063_v1 }
  0x16   : > { %s3072_s28 = smov [#allocation2]  }
  0x17   : > { %s2539_s20 = sshll.u32 %s3175_s17, 3  ;;  %s310_s14 = scalar_lea.vmem %s3715_s2, %s3175_s17 }
  0x18   : > { %s302_s8 = scalar_lea.vmem %s3713_s0, %s2539_s20  ;;  %2623 = vmatpush3.bf16.msra.mxu1 %v3191_v4  ;;  %s307_s19 = scalar_lea.vmem %s3714_s1, %s2539_s20 }
  0x19   : > { %v2879_v5 = vld [vmem:[%s302_s8] sm:$0xff]   ;;  %2624 = vmatprep.subr.bf16.mxu1 %v3063_v1  ;;  %s3067_s20 = smov 96   ;;  %s3003_s21 = sshll.u32 %s3072_s28, 4  ;;  %s3004_s21 = int_to_ptr.vmem [resolvable:$false] %s3003_s21 }
  0x1a   : > { %2615 = vmatmul.mubr.msk.bf16.vlgmr.msra.gmra.mrb[0].mxu0 %vm345_vm1, %v2879_v5  ;;  %v316_v26 = vld [vmem:[%s307_s19] sm:$0xf]  ;;  %v317_v29 = vld [vmem:[%s307_s19 + $0x4] sm:$0xf]  ;;  %s3005_s22 = scalar_lea.vmem %s3004_s21, 64 }
  0x1b   : > { %2632 = vmatprep.mubr.msk.bf16.mxu0 %vm3064_vm0, %v3063_v1  ;;  %vm525_vm3 = vcmp.gt.bf16.partialorder %v316_v26, 0  ;;  %vm526_vm4 = vcmp.gt.bf16.partialorder %v317_v29, 0 }
  0x1c   : > { %2625 = vmatpush3.bf16.msra.mxu1 %v3208_v6  ;;  %v527_v30 = vsel %vm525_vm3, 65537, %v3066_v8  ;;  %v528_v34 = vsel %vm526_vm4, 65537, %v3066_v8 }
  0x1d   : > { %2648 = vmatprep.subr.bf16.mxu1 %v3063_v1  ;;  %v529_v33 = vunpack.c.l.b16 %v527_v30  ;;  %v530_v40 = vunpack.c.l.b16 %v528_v34 }
  0x1f   : > { %vm3248_vm5 = vcmp.ne.s32.totalorder %v529_v33, 0  ;;  %vm3254_vm8 = vcmp.ne.s32.totalorder %v530_v40, 0 }
  0xed   : > { %v383_v9 = vpop.f32.mrb[0].mxu0 }
  0xee   : > { %v2616_v10 = vpop.f32.mrb[1].mxu0 }
  0xef   : > { %v386_v11 = vpop.f32.mrb[2].mxu0 }
  0xf0   : > { %v3214_v12 = vpack.c.bf16 %v386_v11, %v383_v9  ;;  %v2617_v13 = vpop.f32.mrb[3].mxu0 }
  0xf2   : > { %2627 = vmatmul.mubr.msk.bf16.vlgmr.msra.gmra.mrb[0].mxu1 %vm415_vm2, %v3214_v12  ;;  %v417_v14 = vsel %vm415_vm2, %v3214_v12, 0 }
  0xf3   : > { %2631 = vmatpush3.bf16.xpose.msra.mxu0 %v417_v14  ;;  %2652 = vmatprep.mubr.msk.bf16.mxu1 %vm3064_vm0, %v3063_v1 }
  0xf4   : > { %2636 = vmatprep.subr.bf16.mxu0 %v3063_v1 }
  0xfa   : > { %2633 = vmatmul.mubr.msk.bf16.vlgmr.msra.gmra.mrb[4].mxu0 %vm415_vm2, %v321_v15 }
  0xfb   : > { %2638 = vmatprep.mubr.msk.bf16.mxu0 %vm3064_vm0, %v3063_v1 }
 0x1c5   : > { %v453_v16 = vpop.f32.mrb[0].mxu1 }
 0x1c6   : > { %505 = vperm.xlu1 %2871, %v453_v16   ;;  %559 = vperm.xlu0 %2870, %v453_v16   ;;  %v2628_v17 = vpop.f32.mrb[1].mxu1 }
 0x1c7   : > { %v456_v18 = vpop.f32.mrb[2].mxu1 }
 0x1c8   : > { %v2629_v19 = vpop.f32.mrb[3].mxu1 }
 0x1ca   : > { %510 = vperm.xlu1 %2871, %v456_v18   ;;  %563 = vperm.xlu0 %2870, %v456_v18  }
 0x1cd   : > { %v497_v20 = vpop.f32.mrb[4].mxu0 }
 0x1ce   : > { %v2634_v21 = vpop.f32.mrb[5].mxu0  ;;  %2872 = vset.pattern.permute.xlu1 %v3065_v7  ;;  %2874 = vset.pattern.permute.xlu0 %v3066_v8  ;;  %v516_v31 = vrot.slane %v497_v20, %v3239_v27  ;;  %v569_v32 = vrot.slane %v497_v20, %v3242_v28 }
 0x1cf   : > { %v500_v22 = vpop.f32.mrb[6].mxu0 }
 0x1d0   : > { %v2635_v23 = vpop.f32.mrb[7].mxu0 }
 0x245   : > { %v506_v35 = vpop.permute.xlu1 %505  ;;  %v560_v36 = vpop.permute.xlu0 %559 }
 0x246   : > { %v517_v37 = vadd.f32 %v516_v31, %v506_v35  ;;  %v570_v38 = vadd.f32 %v569_v32, %v560_v36 }
 0x248   : > { %v521_v41 = vmul.f32 0.2, %v517_v37  ;;  %v574_v42 = vmul.f32 0.2, %v570_v38  ;;  %vm572_vm6 = vcmp.gt.f32.partialorder %v570_v38, 0.0  ;;  %vm519_vm7 = vcmp.gt.f32.partialorder %v517_v37, 0.0 }
 0x249   : > { %v511_v43 = vpop.permute.xlu1 %510  ;;  %v564_v44 = vpop.permute.xlu0 %563 }
 0x24a   : > { %v518_v45 = vadd.f32 %v516_v31, %v511_v43  ;;  %v571_v46 = vadd.f32 %v569_v32, %v564_v44  ;;  %v576_v47 = vsel %vm572_vm6, %v570_v38, %v574_v42  ;;  %v523_v48 = vsel %vm519_vm7, %v517_v37, %v521_v41 }
 0x24b   : > { %v578_v49 = vsel %vm3248_vm5, %v576_v47, -1e+30  ;;  %v533_v54 = vsel %vm3248_vm5, %v523_v48, -1e+30 }
 0x24c   : > { %v522_v51 = vmul.f32 0.2, %v518_v45  ;;  %v575_v52 = vmul.f32 0.2, %v571_v46  ;;  %v580_v53 = vsel %vm345_vm1, %v578_v49, -inf  ;;  %vm573_vm9 = vcmp.gt.f32.partialorder %v571_v46, 0.0 }
 0x24d   : > { %581 = vmax.xlane.f32.xlu0 %v580_v53  ;;  %vm520_vm10 = vcmp.gt.f32.partialorder %v518_v45, 0.0  ;;  %v535_v59 = vsel %vm345_vm1, %v533_v54, -inf }
 0x24e   : > { %v577_v55 = vsel %vm573_vm9, %v571_v46, %v575_v52  ;;  %v524_v56 = vsel %vm520_vm10, %v518_v45, %v522_v51  ;;  %v3286_v45 = vld [vmem:[%s3717_s4] sm:$0xff]  ;;  %vm2224_vm9 = vcmask 254976  }
 0x24f   : > { %v579_v57 = vsel %vm3254_vm8, %v577_v55, -1e+30  ;;  %v534_v60 = vsel %vm3254_vm8, %v524_v56, -1e+30 }
 0x250   : > { %v583_v58 = vsel %vm345_vm1, %v579_v57, -inf  ;;  %v538_v61 = vsel %vm345_vm1, %v534_v60, -inf }
 0x251   : > { %584 = vmax.xlane.f32.xlu1 %v583_v58  ;;  %536 = vmax.xlane.f32.xlu0 %v535_v59 }
 0x255   : > { %539 = vmax.xlane.f32.xlu0 %v538_v61 }
 0x2da   : > { %v582_v62 = vpop.xlane.xlu0 %581 }
 0x2db   : > { %v586_v63 = vsub.f32 %v578_v49, %v582_v62 }
 0x2dd   : > { %v588_v0 = vmul.f32 1.442695, %v586_v63 }
 0x2de   : > { %v585_v5 = vpop.xlane.xlu1 %584  ;;  %v537_v9 = vpop.xlane.xlu0 %536 }
 0x2df   : > { %2897 = vpow2.f32 %v588_v0  ;;  %v587_v10 = vsub.f32 %v579_v57, %v585_v5  ;;  %v541_v11 = vsub.f32 %v533_v54, %v537_v9 }
 0x2e1   : > { %v590_v13 = vmul.f32 1.442695, %v587_v10  ;;  %v543_v14 = vmul.f32 1.442695, %v541_v11  ;;  %v2884_v10 = vld [vmem:[%s3716_s3 + $0x8] sm:$0xff]   ;;  %v2885_v11 = vld [vmem:[%s3716_s3 + $0x10] sm:$0xff]  }
 0x2e2   : > { %v540_v15 = vpop.xlane.xlu0 %539  ;;  %2649 = vmatpush3.bf16.msra.mxu1 %v2884_v10 }
 0x2e3   : > { %2899 = vpow2.f32 %v590_v13  ;;  %v542_v16 = vsub.f32 %v534_v60, %v540_v15  ;;  %2650 = vmatprep.subr.bf16.mxu1 %v3063_v1 }
 0x2e4   : > { %2901 = vpow2.f32 %v543_v14 }
 0x2e5   : > { %v545_v17 = vmul.f32 1.442695, %v542_v16 }
 0x2e6   : > { %2651 = vmatpush3.bf16.msra.mxu1 %v2885_v11 }
 0x2e7   : > { %2903 = vpow2.f32 %v545_v17  ;;  %2656 = vmatprep.subr.bf16.mxu1 %v3063_v1 }
 0x2e9   : > { %v2898_v18 = vpop.eup %2897 }
 0x2ea   : > { %v592_v19 = vsel %vm345_vm1, %v2898_v18, 0.0 }
 0x2eb   : > { %593 = vadd.xlane.f32.xlu1 %v592_v19  ;;  %v734_v19 = vrot.slane %v3286_v45, %v3242_v28 }
 0x2ed   : > { %v2900_v20 = vpop.eup %2899 }
 0x2ee   : > { %v2902_v21 = vpop.eup %2901  ;;  %v595_v22 = vsel %vm345_vm1, %v2900_v20, 0.0 }
 0x2ef   : > { %596 = vadd.xlane.f32.xlu0 %v595_v22  ;;  %v547_v23 = vsel %vm345_vm1, %v2902_v21, 0.0 }
 0x2f0   : > { %548 = vadd.xlane.f32.xlu1 %v547_v23 }
 0x2f1   : > { %v2904_v24 = vpop.eup %2903 }
 0x2f2   : > { %v550_v26 = vsel %vm345_vm1, %v2904_v24, 0.0 }
 0x2f3   : > { %551 = vadd.xlane.f32.xlu0 %v550_v26 }
 0x301   : > { %604 = vrot.lane.b32.xlu1 %v3214_v12, %s3067_s20 }
 0x305   : > { %807 = vrot.lane.b32.xlu1 %v3170_v2, %s3068_s13 }
 0x309   : > { %811 = vrot.lane.b32.xlu1 %v3191_v4, %s3068_s13 }
 0x30d   : > { %813 = vrot.lane.b32.xlu1 %v3208_v6, %s3068_s13 }
 0x378   : > { %v594_v29 = vpop.xlane.xlu1 %593 }
 0x379   : > { %2905 = vrcp.f32 %v594_v29 }
 0x37c   : > { %v597_v30 = vpop.xlane.xlu0 %596 }
 0x37d   : > { %v549_v31 = vpop.xlane.xlu1 %548  ;;  %2907 = vrcp.f32 %v597_v30 }
 0x380   : > { %v552_v33 = vpop.xlane.xlu0 %551 }
 0x381   : > { %v605_v32 = vpop.permute.xlu1 %604  ;;  %2909 = vrcp.f32 %v552_v33 }
 0x382   : > { %2637 = vmatpush3.bf16.msra.mxu0 %v605_v32  ;;  %2911 = vrcp.f32 %v549_v31 }
 0x383   : > { %2642 = vmatprep.subr.bf16.mxu0 %v3063_v1  ;;  %v2906_v34 = vpop.eup %2905 }
 0x384   : > { %v600_v36 = vmul.f32 %v2906_v34, %v2898_v18 }
 0x385   : > { %v808_v34 = vpop.permute.xlu1 %807 }
 0x387   : > { %v2908_v35 = vpop.eup %2907 }
 0x388   : > { %v601_v37 = vmul.f32 %v2908_v35, %v2900_v20  ;;  %v739_v20 = vsub.s32 2, %v3236_v25 }
 0x38a   : > { %v602_v38 = vpack.c.bf16 %v601_v37, %v600_v36  ;;  %v740_v4 = vrot.slane %v3286_v45, %v739_v20  ;;  %v812_v36 = vpop.permute.xlu1 %811 }
 0x38b   : > { %v2910_v40 = vpop.eup %2909 }
 0x38c   : > { %2639 = vmatmul.mubr.msk.bf16.vlgmr.msra.gmra.mrb[8].mxu0 %vm345_vm1, %v602_v38  ;;  %v2912_v41 = vpop.eup %2911  ;;  %v556_v42 = vmul.f32 %v2910_v40, %v2904_v24 }
 0x38d   : > { %2643 = vmatpush3.bf16.msra.mxu0 %v3214_v12  ;;  %2644 = vmatprep.mubr.msk.bf16.mxu0 %vm3064_vm0, %v3063_v1  ;;  %v555_v43 = vmul.f32 %v2912_v41, %v2902_v21  ;;  %v700_v12 = vrot.slane %v3286_v45, %v3239_v27 }
 0x38e   : > { %2668 = vmatprep.subr.bf16.mxu0 %v3063_v1  ;;  %v814_v37 = vpop.permute.xlu1 %813 }
 0x38f   : > { %v557_v44 = vpack.c.bf16 %v556_v42, %v555_v43 }
 0x398   : > { %2645 = vmatmul.mubr.msk.bf16.vlgmr.msra.gmra.mrb[8].mxu0 %vm345_vm1, %v557_v44 }
 0x399   : > { %2670 = vmatprep.mubr.msk.bf16.mxu0 %vm3064_vm0, %v3063_v1 }
 0x46b   : > { %v688_v46 = vpop.f32.mrb[8].mxu0 }
 0x46c   : > { %v695_v47 = vmul.f32 0.5, %v688_v46  ;;  %v2646_v48 = vpop.f32.mrb[9].mxu0 }
 0x46d   : > { %v691_v49 = vpop.f32.mrb[10].mxu0 }
 0x46e   : > { %v696_v51 = vmul.f32 0.5, %v691_v49  ;;  %v2647_v52 = vpop.f32.mrb[11].mxu0  ;;  %v701_v53 = vadd.f32 %v700_v12, %v695_v47 }
 0x470   : > { %v704_v54 = vsel %vm703_vm11, %v701_v53, 0.0  ;;  %v702_v55 = vadd.f32 %v700_v12, %v696_v51  ;;  %v322_v12 = vld [vmem:[%s3718_s5 + $0x8] sm:$0xf] }
 0x471   : > { %705 = vadd.xlane.f32.xlu0 %v704_v54 }
 0x472   : > { %v707_v56 = vsel %vm703_vm11, %v702_v55, 0.0 }
 0x475   : > { %708 = vadd.xlane.f32.xlu0 %v707_v56 }
 0x4fe   : > { %v706_v57 = vpop.xlane.xlu0 %705 }
 0x4ff   : > { %v711_v58 = vmul.f32 0.03125, %v706_v57 }
 0x501   : > { %v713_v59 = vsub.f32 %v701_v53, %v711_v58 }
 0x502   : > { %v709_v60 = vpop.xlane.xlu0 %708 }
 0x503   : > { %v712_v61 = vmul.f32 0.03125, %v709_v60  ;;  %v715_v62 = vmul.f32 %v713_v59, %v713_v59 }
 0x505   : > { %v714_v63 = vsub.f32 %v702_v55, %v712_v61  ;;  %v717_v0 = vsel %vm703_vm11, %v715_v62, 0.0 }
 0x506   : > { %718 = vadd.xlane.f32.xlu0 %v717_v0 }
 0x507   : > { %v716_v5 = vmul.f32 %v714_v63, %v714_v63 }
 0x509   : > { %v720_v9 = vsel %vm703_vm11, %v716_v5, 0.0 }
 0x50a   : > { %721 = vadd.xlane.f32.xlu0 %v720_v9 }
 0x520   : > { %809 = vrot.lane.b32.xlu0 %v3181_v3, %s3068_s13 }
 0x593   : > { %v719_v13 = vpop.xlane.xlu0 %718 }
 0x594   : > { %v723_v14 = vmul.f32 0.03125, %v719_v13 }
 0x596   : > { %v725_v15 = vadd.f32 1e-05, %v723_v14 }
 0x597   : > { %v722_v16 = vpop.xlane.xlu0 %721 }
 0x598   : > { %2913 = vrsqrt.f32 %v725_v15  ;;  %v724_v17 = vmul.f32 0.03125, %v722_v16 }
 0x59a   : > { %v726_v18 = vadd.f32 1e-05, %v724_v17 }
 0x59b   : > { %v810_v35 = vpop.permute.xlu0 %809 }
 0x59c   : > { %2915 = vrsqrt.f32 %v726_v18 }
 0x5a2   : > { %v2914_v21 = vpop.eup %2913 }
 0x5a3   : > { %v729_v22 = vmul.f32 %v2914_v21, %v713_v59 }
 0x5a5   : > { %v735_v23 = vmul.f32 %v734_v19, %v729_v22 }
 0x5a6   : > { %v2916_v6 = vpop.eup %2915 }
 0x5a7   : > { %v730_v24 = vmul.f32 %v2916_v6, %v714_v63  ;;  %v3316_v29 = vadd.f32 %v740_v4, %v735_v23 }
 0x5a9   : > { %v736_v26 = vmul.f32 %v734_v19, %v730_v24  ;;  %v743_v31 = vmax.f32 %v3316_v29, 0.0 }
 0x5ab   : > { %v3318_v30 = vadd.f32 %v740_v4, %v736_v26 }
 0x5ad   : > { %v744_v32 = vmax.f32 %v3318_v30, 0.0 }
 0x5af   : > { %v745_v33 = vpack.c.bf16 %v744_v32, %v743_v31 }
 0x5b1   : > { %2653 = vmatmul.mubr.msk.bf16.vlgmr.msra.gmra.mrb[4].mxu1 %vm703_vm11, %v745_v33 }
 0x5b2   : > { %2657 = vmatpush3.bf16.msra.mxu1 %v808_v34  ;;  %2664 = vmatprep.mubr.msk.bf16.mxu1 %vm3064_vm0, %v3063_v1 }
 0x5b3   : > { %2658 = vmatprep.subr.bf16.mxu1 %v3063_v1 }
 0x5b6   : > { %2659 = vmatpush3.bf16.msra.mxu1 %v810_v35 }
 0x5b7   : > { %2660 = vmatprep.subr.bf16.mxu1 %v3063_v1 }
 0x5ba   : > { %2661 = vmatpush3.bf16.msra.mxu1 %v812_v36 }
 0x5bb   : > { %2662 = vmatprep.subr.bf16.mxu1 %v3063_v1 }
 0x5be   : > { %2663 = vmatpush3.bf16.msra.mxu1 %v814_v37 }
 0x5bf   : > { %2686 = vmatprep.subr.bf16.mxu1 %v3063_v1 }
 0x684   : > { %v799_v38 = vpop.f32.mrb[4].mxu1 }
 0x685   : > { %v2654_v40 = vpop.f32.mrb[5].mxu1 }
 0x686   : > { %v802_v41 = vpop.f32.mrb[6].mxu1 }
 0x687   : > { %v3333_v42 = vpack.c.bf16 %v802_v41, %v799_v38  ;;  %v2655_v43 = vpop.f32.mrb[7].mxu1 }
 0x689   : > { %2665 = vmatmul.mubr.msk.bf16.vlgmr.msra.gmra.mrb[8].mxu1 %vm415_vm2, %v3333_v42  ;;  %v820_v44 = vsel %vm415_vm2, %v3333_v42, 0 }
 0x68a   : > { %2669 = vmatpush3.bf16.xpose.msra.mxu0 %v820_v44  ;;  %2690 = vmatprep.mubr.msk.bf16.mxu1 %vm3064_vm0, %v3063_v1 }
 0x68b   : > { %2674 = vmatprep.subr.bf16.mxu0 %v3063_v1 }
 0x691   : > { %2671 = vmatmul.mubr.msk.bf16.vlgmr.msra.gmra.mrb[12].mxu0 %vm415_vm2, %v322_v12 }
 0x692   : > { %2676 = vmatprep.mubr.msk.bf16.mxu0 %vm3064_vm0, %v3063_v1 }
 0x75c   : > { %v856_v46 = vpop.f32.mrb[8].mxu1 }
 0x75d   : > { %954 = vperm.xlu1 %2872, %v856_v46   ;;  %v2666_v47 = vpop.f32.mrb[9].mxu1 }
 0x75e   : > { %v859_v48 = vpop.f32.mrb[10].mxu1 }
 0x75f   : > { %913 = vperm.xlu0 %2874, %v859_v48   ;;  %v2667_v49 = vpop.f32.mrb[11].mxu1 }
 0x761   : > { %958 = vperm.xlu1 %2872, %v859_v48  }
 0x763   : > { %2877 = vset.pattern.permute.xlu0 %v3065_v7 }
 0x764   : > { %v900_v51 = vpop.f32.mrb[12].mxu0 }
 0x765   : > { %2873 = vset.pattern.permute.xlu1 %v3066_v8  ;;  %v2672_v52 = vpop.f32.mrb[13].mxu0  ;;  %v964_v55 = vrot.slane %v900_v51, %v3242_v28  ;;  %v919_v56 = vrot.slane %v900_v51, %v3239_v27 }
 0x766   : > { %908 = vperm.xlu1 %2873, %v856_v46   ;;  %v903_v53 = vpop.f32.mrb[14].mxu0 }
 0x767   : > { %v2673_v54 = vpop.f32.mrb[15].mxu0 }
 0x76a   : > { %2875 = vset.pattern.permute.xlu1 %v3065_v7 }
 0x7dc   : > { %v955_v57 = vpop.permute.xlu1 %954 }
 0x7dd   : > { %v965_v58 = vadd.f32 %v964_v55, %v955_v57 }
 0x7de   : > { %v914_v59 = vpop.permute.xlu0 %913 }
 0x7df   : > { %v969_v60 = vmul.f32 0.2, %v965_v58  ;;  %v921_v61 = vadd.f32 %v919_v56, %v914_v59  ;;  %vm967_vm12 = vcmp.gt.f32.partialorder %v965_v58, 0.0 }
 0x7e0   : > { %v959_v62 = vpop.permute.xlu1 %958 }
 0x7e1   : > { %v925_v63 = vmul.f32 0.2, %v921_v61  ;;  %v966_v0 = vadd.f32 %v964_v55, %v959_v62  ;;  %v971_v5 = vsel %vm967_vm12, %v965_v58, %v969_v60  ;;  %vm923_vm13 = vcmp.gt.f32.partialorder %v921_v61, 0.0 }
 0x7e2   : > { %v973_v9 = vsel %vm3248_vm5, %v971_v5, -1e+30 }
 0x7e3   : > { %v970_v10 = vmul.f32 0.2, %v966_v0  ;;  %v975_v7 = vsel %vm345_vm1, %v973_v9, -inf  ;;  %vm968_vm14 = vcmp.gt.f32.partialorder %v966_v0, 0.0  ;;  %v927_v14 = vsel %vm923_vm13, %v921_v61, %v925_v63 }
 0x7e4   : > { %976 = vmax.xlane.f32.xlu1 %v975_v7  ;;  %v929_v19 = vsel %vm3254_vm8, %v927_v14, -1e+30 }
 0x7e5   : > { %v909_v11 = vpop.permute.xlu1 %908  ;;  %v972_v13 = vsel %vm968_vm14, %v966_v0, %v970_v10  ;;  %v933_v22 = vsel %vm345_vm1, %v929_v19, -inf  ;;  %v1094_v10 = vsub.s32 3, %v3236_v25 }
 0x7e6   : > { %v920_v15 = vadd.f32 %v919_v56, %v909_v11  ;;  %v974_v16 = vsel %vm3254_vm8, %v972_v13, -1e+30 }
 0x7e7   : > { %v978_v17 = vsel %vm345_vm1, %v974_v16, -inf }
 0x7e8   : > { %v924_v18 = vmul.f32 0.2, %v920_v15  ;;  %979 = vmax.xlane.f32.xlu0 %v978_v17  ;;  %vm922_vm15 = vcmp.gt.f32.partialorder %v920_v15, 0.0 }
 0x7ea   : > { %v926_v21 = vsel %vm922_vm15, %v920_v15, %v924_v18 }
 0x7eb   : > { %v928_v23 = vsel %vm3248_vm5, %v926_v21, -1e+30 }
 0x7ec   : > { %934 = vmax.xlane.f32.xlu0 %v933_v22  ;;  %v930_v4 = vsel %vm345_vm1, %v928_v23, -inf }
 0x7ed   : > { %931 = vmax.xlane.f32.xlu1 %v930_v4 }
 0x871   : > { %v977_v6 = vpop.xlane.xlu1 %976 }
 0x872   : > { %v981_v24 = vsub.f32 %v973_v9, %v977_v6 }
 0x874   : > { %v983_v26 = vmul.f32 1.442695, %v981_v24 }
 0x875   : > { %v980_v33 = vpop.xlane.xlu0 %979 }
 0x876   : > { %2917 = vpow2.f32 %v983_v26  ;;  %v982_v34 = vsub.f32 %v974_v16, %v980_v33 }
 0x878   : > { %v985_v35 = vmul.f32 1.442695, %v982_v34 }
 0x879   : > { %v935_v36 = vpop.xlane.xlu0 %934 }
 0x87a   : > { %2919 = vpow2.f32 %v985_v35  ;;  %v937_v37 = vsub.f32 %v929_v19, %v935_v36  ;;  %v932_v38 = vpop.xlane.xlu1 %931 }
 0x87b   : > { %v936_v40 = vsub.f32 %v928_v23, %v932_v38  ;;  %v2887_v38 = vld [vmem:[%s3716_s3 + $0x30] sm:$0xff]  }
 0x87c   : > { %v940_v41 = vmul.f32 1.442695, %v937_v37  ;;  %v2886_v37 = vld [vmem:[%s3716_s3 + $0x28] sm:$0xff]  }
 0x87d   : > { %v938_v43 = vmul.f32 1.442695, %v936_v40  ;;  %2687 = vmatpush3.bf16.msra.mxu1 %v2886_v37 }
 0x87e   : > { %2921 = vpow2.f32 %v940_v41  ;;  %2688 = vmatprep.subr.bf16.mxu1 %v3063_v1 }
 0x87f   : > { %2923 = vpow2.f32 %v938_v43 }
 0x880   : > { %v2918_v44 = vpop.eup %2917 }
 0x881   : > { %v987_v12 = vsel %vm345_vm1, %v2918_v44, 0.0  ;;  %2689 = vmatpush3.bf16.msra.mxu1 %v2887_v38 }
 0x882   : > { %988 = vadd.xlane.f32.xlu1 %v987_v12  ;;  %2694 = vmatprep.subr.bf16.mxu1 %v3063_v1 }
 0x884   : > { %v2920_v46 = vpop.eup %2919 }
 0x885   : > { %v990_v47 = vsel %vm345_vm1, %v2920_v46, 0.0 }
 0x886   : > { %991 = vadd.xlane.f32.xlu0 %v990_v47  ;;  %v1132_v47 = vsub.s32 5, %v3236_v25 }
 0x888   : > { %v2922_v48 = vpop.eup %2921 }
 0x889   : > { %v2924_v49 = vpop.eup %2923  ;;  %v945_v51 = vsel %vm345_vm1, %v2922_v48, 0.0 }
 0x88a   : > { %946 = vadd.xlane.f32.xlu0 %v945_v51  ;;  %v942_v52 = vsel %vm345_vm1, %v2924_v49, 0.0 }
 0x88b   : > { %943 = vadd.xlane.f32.xlu1 %v942_v52  ;;  %v1133_v52 = vrot.slane %v3286_v45, %v1132_v47 }
 0x89c   : > { %999 = vrot.lane.b32.xlu1 %v3333_v42, %s3067_s20 }
 0x8a0   : > { %1263 = vrot.lane.b32.xlu1 %v3170_v2, %s3067_s20 }
 0x90f   : > { %v989_v53 = vpop.xlane.xlu1 %988 }
 0x910   : > { %2925 = vrcp.f32 %v989_v53 }
 0x913   : > { %v992_v54 = vpop.xlane.xlu0 %991 }
 0x914   : > { %2927 = vrcp.f32 %v992_v54 }
 0x917   : > { %v947_v55 = vpop.xlane.xlu0 %946 }
 0x918   : > { %v944_v56 = vpop.xlane.xlu1 %943  ;;  %2929 = vrcp.f32 %v947_v55 }
 0x919   : > { %2931 = vrcp.f32 %v944_v56 }
 0x91a   : > { %v2926_v57 = vpop.eup %2925 }
 0x91b   : > { %v995_v60 = vmul.f32 %v2926_v57, %v2918_v44 }
 0x91c   : > { %v1000_v58 = vpop.permute.xlu1 %999 }
 0x91d   : > { %2675 = vmatpush3.bf16.msra.mxu0 %v1000_v58 }
 0x91e   : > { %v2928_v59 = vpop.eup %2927  ;;  %2680 = vmatprep.subr.bf16.mxu0 %v3063_v1 }
 0x91f   : > { %v996_v61 = vmul.f32 %v2928_v59, %v2920_v46  ;;  %v1126_v46 = vsub.s32 4, %v3236_v25 }
 0x920   : > { %v1264_v29 = vpop.permute.xlu1 %1263 }
 0x921   : > { %v997_v62 = vpack.c.bf16 %v996_v61, %v995_v60 }
 0x922   : > { %v2930_v2 = vpop.eup %2929 }
 0x923   : > { %2677 = vmatmul.mubr.msk.bf16.vlgmr.msra.gmra.mrb[16].mxu0 %vm345_vm1, %v997_v62  ;;  %v2932_v63 = vpop.eup %2931  ;;  %v951_v0 = vmul.f32 %v2930_v2, %v2922_v48  ;;  %v1127_v48 = vrot.slane %v3286_v45, %v1126_v46  ;;  %v2888_v2 = vld [vmem:[%s3716_s3 + $0x18] sm:$0xff]  }
 0x924   : > { %2681 = vmatpush3.bf16.msra.mxu0 %v3333_v42  ;;  %2682 = vmatprep.mubr.msk.bf16.mxu0 %vm3064_vm0, %v3063_v1  ;;  %v950_v5 = vmul.f32 %v2932_v63, %v2924_v49  ;;  %v1095_v42 = vrot.slane %v3286_v45, %v1094_v10 }
 0x925   : > { %2702 = vmatprep.subr.bf16.mxu0 %v3063_v1 }
 0x926   : > { %v952_v9 = vpack.c.bf16 %v951_v0, %v950_v5  ;;  %v2889_v0 = vld [vmem:[%s3716_s3 + $0x20] sm:$0xff]  }
 0x92f   : > { %2683 = vmatmul.mubr.msk.bf16.vlgmr.msra.gmra.mrb[16].mxu0 %vm345_vm1, %v952_v9 }
 0x930   : > { %2706 = vmatprep.mubr.msk.bf16.mxu0 %vm3064_vm0, %v3063_v1  ;;  %2703 = vmatpush3.bf16.msra.mxu0 %v1264_v29 }
 0x931   : > { %2704 = vmatprep.subr.bf16.mxu0 %v3063_v1 }
 0xa02   : > { %v1083_v7 = vpop.f32.mrb[16].mxu0 }
 0xa03   : > { %v1090_v11 = vmul.f32 0.5, %v1083_v7  ;;  %v2684_v13 = vpop.f32.mrb[17].mxu0 }
 0xa04   : > { %v1086_v14 = vpop.f32.mrb[18].mxu0 }
 0xa05   : > { %v1091_v15 = vmul.f32 0.5, %v1086_v14  ;;  %v2685_v16 = vpop.f32.mrb[19].mxu0  ;;  %v1096_v17 = vadd.f32 %v1095_v42, %v1090_v11 }
 0xa06   : > { %v323_v16 = vld [vmem:[%s3718_s5 + $0x10] sm:$0xf] }
 0xa07   : > { %v1098_v18 = vsel %vm703_vm11, %v1096_v17, 0.0  ;;  %v1097_v19 = vadd.f32 %v1095_v42, %v1091_v15 }
 0xa08   : > { %1099 = vadd.xlane.f32.xlu0 %v1098_v18  ;;  %v3456_v18 = vld [vmem:[%s3716_s3 + $0x40] sm:$0xff]  }
 0xa09   : > { %v1101_v21 = vsel %vm703_vm11, %v1097_v19, 0.0 }
 0xa0c   : > { %1102 = vadd.xlane.f32.xlu0 %v1101_v21 }
 0xa95   : > { %v1100_v22 = vpop.xlane.xlu0 %1099 }
 0xa96   : > { %v1104_v23 = vmul.f32 0.03125, %v1100_v22 }
 0xa98   : > { %v1106_v4 = vsub.f32 %v1096_v17, %v1104_v23  ;;  %v3450_v17 = vld [vmem:[%s3716_s3 + $0x38] sm:$0xff]  }
 0xa99   : > { %v1103_v6 = vpop.xlane.xlu0 %1102 }
 0xa9a   : > { %v1105_v24 = vmul.f32 0.03125, %v1103_v6  ;;  %v1108_v26 = vmul.f32 %v1106_v4, %v1106_v4 }
 0xa9c   : > { %v1107_v33 = vsub.f32 %v1097_v19, %v1105_v24  ;;  %v1110_v34 = vsel %vm703_vm11, %v1108_v26, 0.0 }
 0xa9d   : > { %1111 = vadd.xlane.f32.xlu0 %v1110_v34 }
 0xa9e   : > { %v1109_v35 = vmul.f32 %v1107_v33, %v1107_v33 }
 0xaa0   : > { %v1113_v36 = vsel %vm703_vm11, %v1109_v35, 0.0 }
 0xaa1   : > { %1114 = vadd.xlane.f32.xlu0 %v1113_v36 }
 0xab7   : > { %1265 = vrot.lane.b32.xlu0 %v3181_v3, %s3067_s20 }
 0xb2a   : > { %v1112_v40 = vpop.xlane.xlu0 %1111 }
 0xb2b   : > { %v1116_v41 = vmul.f32 0.03125, %v1112_v40 }
 0xb2d   : > { %v1118_v43 = vadd.f32 1e-05, %v1116_v41 }
 0xb2e   : > { %v1115_v44 = vpop.xlane.xlu0 %1114 }
 0xb2f   : > { %2933 = vrsqrt.f32 %v1118_v43  ;;  %v1117_v3 = vmul.f32 0.03125, %v1115_v44 }
 0xb31   : > { %v1119_v12 = vadd.f32 1e-05, %v1117_v3 }
 0xb32   : > { %v1266_v30 = vpop.permute.xlu0 %1265 }
 0xb33   : > { %2935 = vrsqrt.f32 %v1119_v12  ;;  %2705 = vmatpush3.bf16.msra.mxu0 %v1266_v30 }
 0xb34   : > { %2716 = vmatprep.subr.bf16.mxu0 %v3063_v1 }
 0xb39   : > { %v2934_v49 = vpop.eup %2933 }
 0xb3a   : > { %v1122_v51 = vmul.f32 %v2934_v49, %v1106_v4 }
 0xb3c   : > { %v1128_v53 = vmul.f32 %v1127_v48, %v1122_v51 }
 0xb3d   : > { %v2936_v54 = vpop.eup %2935 }
 0xb3e   : > { %v1123_v55 = vmul.f32 %v2936_v54, %v1107_v33  ;;  %v1134_v56 = vadd.f32 %v1133_v52, %v1128_v53 }
 0xb40   : > { %v1129_v57 = vmul.f32 %v1127_v48, %v1123_v55  ;;  %v1136_v59 = vadd.f32 %v1134_v56, %v743_v31 }
 0xb42   : > { %v1135_v58 = vadd.f32 %v1133_v52, %v1129_v57  ;;  %v1138_v61 = vmax.f32 %v1136_v59, 0.0 }
 0xb44   : > { %v1137_v60 = vadd.f32 %v1135_v58, %v744_v32 }
 0xb46   : > { %v1139_v62 = vmax.f32 %v1137_v60, 0.0 }
 0xb48   : > { %v1140_v63 = vpack.c.bf16 %v1139_v62, %v1138_v61 }
 0xb4a   : > { %2691 = vmatmul.mubr.msk.bf16.vlgmr.msra.gmra.mrb[12].mxu1 %vm703_vm11, %v1140_v63 }
 0xb4b   : > { %2695 = vmatpush3.bf16.msra.mxu1 %v2888_v2  ;;  %2698 = vmatprep.mubr.msk.bf16.mxu1 %vm3064_vm0, %v3063_v1 }
 0xb4c   : > { %2696 = vmatprep.subr.bf16.mxu1 %v3063_v1 }
 0xb4f   : > { %2697 = vmatpush3.bf16.msra.mxu1 %v2889_v0 }
 0xb50   : > { %2710 = vmatprep.subr.bf16.mxu1 %v3063_v1 }
 0xb52   : > { %2699 = vmatmul.mubr.msk.bf16.vlgmr.msra.gmra.mrb[16].mxu1 %vm703_vm11, %v1140_v63 }
 0xb53   : > { %2712 = vmatprep.mubr.msk.bf16.mxu1 %vm3064_vm0, %v3063_v1 }
 0xc1d   : > { %v3428_v31 = vpop.f32.mrb[12].mxu1 }
 0xc1e   : > { %v2692_v32 = vpop.f32.mrb[13].mxu1 }
 0xc1f   : > { %v3430_v5 = vpop.f32.mrb[14].mxu1 }
 0xc20   : > { %v2693_v9 = vpop.f32.mrb[15].mxu1 }
 0xc25   : > { %v1255_v42 = vpop.f32.mrb[16].mxu1 }
 0xc26   : > { %v2700_v7 = vpop.f32.mrb[17].mxu1 }
 0xc27   : > { %v1258_v11 = vpop.f32.mrb[18].mxu1 }
 0xc28   : > { %v3432_v13 = vpack.c.bf16 %v1258_v11, %v1255_v42  ;;  %v2701_v14 = vpop.f32.mrb[19].mxu1 }
 0xc2a   : > { %2707 = vmatmul.mubr.msk.bf16.vlgmr.msra.gmra.mrb[20].mxu0 %vm703_vm11, %v3432_v13  ;;  %v1270_v15 = vsel %vm703_vm11, %v3432_v13, 0 }
 0xc2b   : > { %2711 = vmatpush3.bf16.xpose.msra.mxu1 %v1270_v15  ;;  %2718 = vmatprep.mubr.msk.bf16.mxu0 %vm3064_vm0, %v3063_v1 }
 0xc2c   : > { %2728 = vmatprep.subr.bf16.mxu1 %v3063_v1 }
 0xc32   : > { %2713 = vmatmul.mubr.msk.bf16.vlgmr.msra.gmra.mrb[20].mxu1 %vm703_vm11, %v323_v16 }
 0xc33   : > { %2732 = vmatprep.mubr.msk.bf16.mxu1 %vm3064_vm0, %v3063_v1  ;;  %2729 = vmatpush3.bf16.msra.mxu1 %v3450_v17 }
 0xc34   : > { %2730 = vmatprep.subr.bf16.mxu1 %v3063_v1 }
 0xc37   : > { %2731 = vmatpush3.bf16.msra.mxu1 %v3456_v18 }
 0xc38   : > { %2736 = vmatprep.subr.bf16.mxu1 %v3063_v1 }
 0xc3a   : > { %2733 = vmatmul.mubr.bf16.vlgmr.msra.gmra.mrb[24].mxu1 %v3066_v8 }
 0xc3b   : > { %2738 = vmatprep.mubr.msk.bf16.mxu1 %vm3064_vm0, %v3063_v1 }
 0xcfd   : > { %v1306_v19 = vpop.f32.mrb[20].mxu0 }
 0xcfe   : > { %1404 = vperm.xlu1 %2875, %v1306_v19   ;;  %v2708_v21 = vpop.f32.mrb[21].mxu0 }
 0xcff   : > { %v1309_v22 = vpop.f32.mrb[22].mxu0 }
 0xd00   : > { %v2709_v23 = vpop.f32.mrb[23].mxu0 }
 0xd02   : > { %1408 = vperm.xlu1 %2875, %v1309_v22  }
 0xd05   : > { %v1350_v4 = vpop.f32.mrb[20].mxu1 }
 0xd06   : > { %2876 = vset.pattern.permute.xlu1 %v3066_v8  ;;  %v2714_v6 = vpop.f32.mrb[21].mxu1  ;;  %v1414_v33 = vrot.slane %v1350_v4, %v3242_v28  ;;  %v1369_v3 = vrot.slane %v1350_v4, %v3239_v27 }
 0xd07   : > { %1358 = vperm.xlu1 %2876, %v1306_v19   ;;  %v1353_v24 = vpop.f32.mrb[22].mxu1 }
 0xd08   : > { %v2715_v26 = vpop.f32.mrb[23].mxu1  ;;  %v3484_v24 = vld [vmem:[%s3717_s4 + $0x8] sm:$0xff] }
 0xd0b   : > { %1363 = vperm.xlu1 %2876, %v1309_v22  }
 0xd0d   : > { %v1649_v2 = vpop.f32.mrb[24].mxu1 }
 0xd0e   : > { %v2734_v63 = vpop.f32.mrb[25].mxu1 }
 0xd0f   : > { %v1652_v0 = vpop.f32.mrb[26].mxu1 }
 0xd10   : > { %v2735_v29 = vpop.f32.mrb[27].mxu1 }
 0xd7d   : > { %v1405_v34 = vpop.permute.xlu1 %1404 }
 0xd7e   : > { %v1415_v35 = vadd.f32 %v1414_v33, %v1405_v34 }
 0xd80   : > { %v1419_v36 = vmul.f32 0.2, %v1415_v35  ;;  %vm1417_vm2 = vcmp.gt.f32.partialorder %v1415_v35, 0.0 }
 0xd81   : > { %v1409_v37 = vpop.permute.xlu1 %1408 }
 0xd82   : > { %v1416_v38 = vadd.f32 %v1414_v33, %v1409_v37  ;;  %v1421_v40 = vsel %vm1417_vm2, %v1415_v35, %v1419_v36  ;;  %v3490_v33 = vrot.slane %v3484_v24, %v739_v20 }
 0xd83   : > { %v1423_v41 = vsel %vm3248_vm5, %v1421_v40, -1e+30 }
 0xd84   : > { %v1420_v43 = vmul.f32 0.2, %v1416_v38  ;;  %v1425_v44 = vsel %vm345_vm1, %v1423_v41, -inf  ;;  %vm1418_vm3 = vcmp.gt.f32.partialorder %v1416_v38, 0.0  ;;  %v1650_v36 = vadd.f32 %v1649_v2, %v3490_v33 }
 0xd85   : > { %1426 = vmax.xlane.f32.xlu1 %v1425_v44 }
 0xd86   : > { %v1359_v12 = vpop.permute.xlu1 %1358  ;;  %v1422_v48 = vsel %vm1418_vm3, %v1416_v38, %v1420_v43  ;;  %v2516_v38 = vmul.f32 -1.442695, %v1650_v36 }
 0xd87   : > { %v1370_v49 = vadd.f32 %v1369_v3, %v1359_v12  ;;  %v1424_v51 = vsel %vm3254_vm8, %v1422_v48, -1e+30 }
 0xd88   : > { %v1428_v52 = vsel %vm345_vm1, %v1424_v51, -inf }
 0xd89   : > { %v1374_v53 = vmul.f32 0.2, %v1370_v49  ;;  %1429 = vmax.xlane.f32.xlu0 %v1428_v52  ;;  %vm1372_vm4 = vcmp.gt.f32.partialorder %v1370_v49, 0.0 }
 0xd8a   : > { %v1364_v54 = vpop.permute.xlu1 %1363 }
 0xd8b   : > { %v1371_v55 = vadd.f32 %v1369_v3, %v1364_v54  ;;  %v1376_v56 = vsel %vm1372_vm4, %v1370_v49, %v1374_v53 }
 0xd8c   : > { %v1378_v57 = vsel %vm3248_vm5, %v1376_v56, -1e+30 }
 0xd8d   : > { %v1375_v58 = vmul.f32 0.2, %v1371_v55  ;;  %v1380_v59 = vsel %vm345_vm1, %v1378_v57, -inf  ;;  %vm1373_vm6 = vcmp.gt.f32.partialorder %v1371_v55, 0.0 }
 0xd8e   : > { %1381 = vmax.xlane.f32.xlu0 %v1380_v59 }
 0xd8f   : > { %v1377_v60 = vsel %vm1373_vm6, %v1371_v55, %v1375_v58 }
 0xd90   : > { %v1379_v61 = vsel %vm3254_vm8, %v1377_v60, -1e+30  ;;  %vm1734_vm8 = vcmask 123904  }
 0xd91   : > { %v1383_v62 = vsel %vm345_vm1, %v1379_v61, -inf }
 0xd92   : > { %1384 = vmax.xlane.f32.xlu1 %v1383_v62  ;;  %v1544_v62 = vsub.s32 6, %v3236_v25 }
 0xe12   : > { %v1427_v30 = vpop.xlane.xlu1 %1426 }
 0xe13   : > { %v1431_v32 = vsub.f32 %v1423_v41, %v1427_v30 }
 0xe15   : > { %v1433_v39 = vmul.f32 1.442695, %v1431_v32 }
 0xe16   : > { %v1430_v9 = vpop.xlane.xlu0 %1429 }
 0xe17   : > { %2937 = vpow2.f32 %v1433_v39  ;;  %v1432_v42 = vsub.f32 %v1424_v51, %v1430_v9 }
 0xe19   : > { %v1435_v7 = vmul.f32 1.442695, %v1432_v42 }
 0xe1b   : > { %2939 = vpow2.f32 %v1435_v7  ;;  %v1382_v11 = vpop.xlane.xlu0 %1381 }
 0xe1c   : > { %v1386_v14 = vsub.f32 %v1378_v57, %v1382_v11 }
 0xe1e   : > { %v1388_v15 = vmul.f32 1.442695, %v1386_v14 }
 0xe1f   : > { %v1385_v50 = vpop.xlane.xlu1 %1384 }
 0xe20   : > { %2941 = vpow2.f32 %v1388_v15  ;;  %v1387_v16 = vsub.f32 %v1379_v61, %v1385_v50 }
 0xe21   : > { %v2938_v19 = vpop.eup %2937 }
 0xe22   : > { %v1390_v21 = vmul.f32 1.442695, %v1387_v16  ;;  %v1437_v22 = vsel %vm345_vm1, %v2938_v19, 0.0 }
 0xe23   : > { %1438 = vadd.xlane.f32.xlu0 %v1437_v22 }
 0xe24   : > { %2943 = vpow2.f32 %v1390_v21 }
 0xe25   : > { %v2940_v23 = vpop.eup %2939  ;;  %2945 = vtanh.f32 %v1650_v36 }
 0xe26   : > { %v1440_v4 = vsel %vm345_vm1, %v2940_v23, 0.0  ;;  %2947 = vpow2.f32 %v2516_v38 }
 0xe27   : > { %1441 = vadd.xlane.f32.xlu1 %v1440_v4 }
 0xe2a   : > { %v2942_v6 = vpop.eup %2941 }
 0xe2b   : > { %v1392_v26 = vsel %vm345_vm1, %v2942_v6, 0.0 }
 0xe2c   : > { %1393 = vadd.xlane.f32.xlu0 %v1392_v26 }
 0xe2e   : > { %v2944_v34 = vpop.eup %2943 }
 0xe2f   : > { %v1395_v35 = vsel %vm345_vm1, %v2944_v34, 0.0  ;;  %v2946_v37 = vpop.eup %2945 }
 0xe30   : > { %1396 = vadd.xlane.f32.xlu1 %v1395_v35  ;;  %v2948_v40 = vpop.eup %2947 }
 0xe31   : > { %v1658_v41 = vadd.f32 1.0, %v2948_v40 }
 0xe41   : > { %1664 = vrot.lane.b32.xlu1 %v2946_v37, %s3067_s20 }
 0xe42   : > { %1449 = vrot.lane.b32.xlu0 %v3432_v13, %s3068_s13  ;;  %s3069_s13 = smov 16  }
 0xeb0   : > { %v1439_v43 = vpop.xlane.xlu0 %1438 }
 0xeb1   : > { %2949 = vrcp.f32 %v1439_v43 }
 0xeb2   : > { %2951 = vrcp.f32 %v1658_v41 }
 0xeb4   : > { %v1442_v20 = vpop.xlane.xlu1 %1441 }
 0xeb5   : > { %2953 = vrcp.f32 %v1442_v20 }
 0xeb9   : > { %v1394_v44 = vpop.xlane.xlu0 %1393 }
 0xebb   : > { %v2950_v3 = vpop.eup %2949 }
 0xebc   : > { %v2952_v49 = vpop.eup %2951  ;;  %v1445_v52 = vmul.f32 %v2950_v3, %v2938_v19 }
 0xebd   : > { %v1450_v12 = vpop.permute.xlu0 %1449  ;;  %v1397_v48 = vpop.xlane.xlu1 %1396  ;;  %v1662_v14 = vmul.f32 0.0, %v2952_v49 }
 0xebe   : > { %2955 = vrcp.f32 %v1397_v48  ;;  %2717 = vmatpush3.bf16.msra.mxu0 %v1450_v12  ;;  %v1577_v12 = vsub.s32 7, %v3236_v25 }
 0xebf   : > { %v2954_v51 = vpop.eup %2953  ;;  %2957 = vrcp.f32 %v1394_v44  ;;  %2722 = vmatprep.subr.bf16.mxu0 %v3063_v1 }
 0xec0   : > { %v1446_v53 = vmul.f32 %v2954_v51, %v2940_v23  ;;  %v1578_v48 = vrot.slane %v3286_v45, %v1577_v12 }
 0xec1   : > { %v1665_v54 = vpop.permute.xlu1 %1664 }
 0xec2   : > { %v1667_v55 = vmul.f32 %v2952_v49, %v1665_v54  ;;  %v1447_v56 = vpack.c.bf16 %v1446_v53, %v1445_v52  ;;  %v1584_v52 = vrot.slane %v3484_v24, %v3239_v27  ;;  %v1148_v53 = vrot.slane %v3484_v24, %v3242_v28 }
 0xec4   : > { %2719 = vmatmul.mubr.msk.bf16.vlgmr.msra.gmra.mrb[24].mxu0 %vm345_vm1, %v1447_v56  ;;  %1669 = vrot.lane.b32.xlu1 %v1667_v55, %s3069_s13 }
 0xec5   : > { %2723 = vmatpush3.bf16.msra.mxu0 %v3432_v13  ;;  %2724 = vmatprep.mubr.msk.bf16.mxu0 %vm3064_vm0, %v3063_v1  ;;  %v1545_v13 = vrot.slane %v3286_v45, %v1544_v62 }
 0xec6   : > { %2742 = vmatprep.subr.bf16.mxu0 %v3063_v1 }
 0xec8   : > { %v2956_v57 = vpop.eup %2955 }
 0xec9   : > { %v2958_v58 = vpop.eup %2957  ;;  %v1401_v59 = vmul.f32 %v2956_v57, %v2944_v34 }
 0xeca   : > { %v1400_v60 = vmul.f32 %v2958_v58, %v2942_v6  ;;  %v1199_v58 = vadd.f32 %v3428_v31, %v1148_v53  ;;  %v318_v31 = vld [vmem:[%s310_s14] sm:$0x1] }
 0xecb   : > { %vm1729_vm5 = vcmp.gt.bf16.partialorder %v318_v31, 0 }
 0xecc   : > { %v1402_v61 = vpack.c.bf16 %v1401_v59, %v1400_v60  ;;  %v1202_v60 = vadd.f32 %v3430_v5, %v1148_v53  ;;  %v1730_v5 = vsel %vm1729_vm5, 65537, %v3066_v8 }
 0xed0   : > { %2725 = vmatmul.mubr.msk.bf16.vlgmr.msra.gmra.mrb[24].mxu0 %vm345_vm1, %v1402_v61 }
 0xed1   : > { %2744 = vmatprep.mubr.msk.bf16.mxu0 %vm3064_vm0, %v3063_v1 }
 0xf36   : > { %v1670_v11 = vpop.permute.xlu1 %1669 }
 0xf37   : > { %v3513_v15 = vadd.f32 %v1670_v11, %v1662_v14 }
 0xf39   : > { %2959 = vtanh.f32 %v3513_v15 }
 0xf43   : > { %v2960_v50 = vpop.eup %2959 }
 0xfa3   : > { %v1533_v2 = vpop.f32.mrb[24].mxu0 }
 0xfa4   : > { %v1540_v63 = vmul.f32 0.5, %v1533_v2  ;;  %v2726_v0 = vpop.f32.mrb[25].mxu0 }
 0xfa5   : > { %v1536_v29 = vpop.f32.mrb[26].mxu0 }
 0xfa6   : > { %v1541_v30 = vmul.f32 0.5, %v1536_v29  ;;  %v2727_v32 = vpop.f32.mrb[27].mxu0  ;;  %v1546_v39 = vadd.f32 %v1545_v13, %v1540_v63  ;;  %v1731_v29 = vunpack.c.l.b16 %v1730_v5 }
 0xfa8   : > { %v1548_v9 = vsel %vm345_vm1, %v1546_v39, 0.0  ;;  %v1547_v42 = vadd.f32 %v1545_v13, %v1541_v30  ;;  %vm3552_vm7 = vcmp.ne.s32.totalorder %v1731_v29, 0 }
 0xfa9   : > { %1549 = vadd.xlane.f32.xlu0 %v1548_v9 }
 0xfaa   : > { %v1551_v7 = vsel %vm345_vm1, %v1547_v42, 0.0 }
 0xfab   : > { %1552 = vadd.xlane.f32.xlu1 %v1551_v7 }
 0xfbf   : > { %1675 = vrot.lane.b32.xlu0 %v2960_v50, %s3070_s23 }
0x1036   : > { %v1550_v16 = vpop.xlane.xlu0 %1549 }
0x1037   : > { %v1555_v19 = vmul.f32 0.0625, %v1550_v16 }
0x1038   : > { %v1553_v21 = vpop.xlane.xlu1 %1552 }
0x1039   : > { %v1557_v22 = vsub.f32 %v1546_v39, %v1555_v19  ;;  %v1556_v23 = vmul.f32 0.0625, %v1553_v21 }
0x103a   : > { %v1676_v36 = vpop.permute.xlu0 %1675 }
0x103b   : > { %v1558_v4 = vsub.f32 %v1547_v42, %v1556_v23  ;;  %v1559_v6 = vmul.f32 %v1557_v22, %v1557_v22  ;;  %v1678_v37 = vmul.f32 %v2952_v49, %v1676_v36 }
0x103d   : > { %v1561_v26 = vsel %vm345_vm1, %v1559_v6, 0.0  ;;  %v1560_v34 = vmul.f32 %v1558_v4, %v1558_v4  ;;  %v1679_v38 = vpack.c.bf16 %v1678_v37, %v1678_v37 }
0x103e   : > { %1562 = vadd.xlane.f32.xlu1 %v1561_v26 }
0x103f   : > { %v1564_v35 = vsel %vm345_vm1, %v1560_v34, 0.0 }
0x1042   : > { %1565 = vadd.xlane.f32.xlu1 %v1564_v35 }
0x1053   : > { %1681 = vrot.lane.b32.xlu1 %v1679_v38, %s3071_s29 }
0x10cb   : > { %v1563_v40 = vpop.xlane.xlu1 %1562 }
0x10cc   : > { %v1567_v41 = vmul.f32 0.0625, %v1563_v40 }
0x10ce   : > { %v1569_v43 = vadd.f32 1e-05, %v1567_v41 }
0x10cf   : > { %v1566_v20 = vpop.xlane.xlu1 %1565 }
0x10d0   : > { %2961 = vrsqrt.f32 %v1569_v43  ;;  %v1568_v44 = vmul.f32 0.0625, %v1566_v20 }
0x10d2   : > { %v1570_v3 = vadd.f32 1e-05, %v1568_v44 }
0x10d3   : > { %v1682_v28 = vpop.permute.xlu1 %1681 }
0x10d4   : > { %2963 = vrsqrt.f32 %v1570_v3 }
0x10da   : > { %v2962_v51 = vpop.eup %2961 }
0x10db   : > { %v1573_v49 = vmul.f32 %v2962_v51, %v1557_v22 }
0x10dd   : > { %v1579_v54 = vmul.f32 %v1578_v48, %v1573_v49 }
0x10de   : > { %v2964_v55 = vpop.eup %2963 }
0x10df   : > { %v1574_v56 = vmul.f32 %v2964_v55, %v1558_v4  ;;  %v1585_v57 = vadd.f32 %v1584_v52, %v1579_v54 }
0x10e1   : > { %v1580_v59 = vmul.f32 %v1578_v48, %v1574_v56  ;;  %v1587_v13 = vadd.f32 %v1585_v57, %v1199_v58 }
0x10e3   : > { %v1586_v61 = vadd.f32 %v1584_v52, %v1580_v59  ;;  %v1589_v2 = vmax.f32 %v1587_v13, 0.0 }
0x10e5   : > { %v1588_v45 = vadd.f32 %v1586_v61, %v1202_v60 }
0x10e7   : > { %v1590_v63 = vmax.f32 %v1588_v45, 0.0 }
0x10e9   : > { %v3530_v0 = vpack.c.bf16 %v1590_v63, %v1589_v2 }
0x10eb   : > { %2743 = vmatpush3.bf16.msra.mxu0 %v3530_v0  ;;  %v3535_v27 = vsel %vm345_vm1, %v3530_v0, 0 }
0x10ec   : > { %2737 = vmatpush3.bf16.xpose.msra.mxu1 %v3535_v27  ;;  %2756 = vmatprep.subr.bf16.mxu0 %v3063_v1 }
0x10ed   : > { %2748 = vmatprep.subr.bf16.mxu1 %v3063_v1 }
0x10f3   : > { %2739 = vmatmul.mubr.msk.bf16.vlgmr.msra.gmra.mrb[28].mxu1 %vm345_vm1, %v1682_v28 }
0x10f4   : > { %2749 = vmatpush3.bf16.msra.mxu1 %v3450_v17  ;;  %2752 = vmatprep.mubr.msk.bf16.mxu1 %vm3064_vm0, %v3063_v1 }
0x10f5   : > { %2750 = vmatprep.subr.bf16.mxu1 %v3063_v1 }
0x10f8   : > { %2751 = vmatpush3.bf16.msra.mxu1 %v3456_v18 }
0x10f9   : > { %2762 = vmatprep.subr.bf16.mxu1 %v3063_v1 }
0x11c6   : > { %v1723_v32 = vpop.f32.mrb[28].mxu1 }
0x11c7   : > { %v1733_v39 = vsel %vm3552_vm7, %v1723_v32, -1e+30  ;;  %v2740_v9 = vpop.f32.mrb[29].mxu1 }
0x11c8   : > { %v1726_v42 = vpop.f32.mrb[30].mxu1  ;;  %v1735_v7 = vsel %vm1734_vm8, %v1733_v39, -inf }
0x11c9   : > { %1736 = vmax.xlane.f32.xlu0 %v1735_v7  ;;  %v2741_v11 = vpop.f32.mrb[31].mxu1 }
0x11df   : > { %1791 = vrot.lane.b32.xlu0 %v1678_v37, %s3071_s29 }
0x1256   : > { %v1737_v14 = vpop.xlane.xlu0 %1736 }
0x1257   : > { %v1738_v8 = vsub.f32 %v1733_v39, %v1737_v14 }
0x1259   : > { %v1739_v50 = vmul.f32 1.442695, %v1738_v8 }
0x125a   : > { %v1792_v36 = vpop.permute.xlu0 %1791 }
0x125b   : > { %2965 = vpow2.f32 %v1739_v50 }
0x1265   : > { %v2966_v16 = vpop.eup %2965 }
0x1266   : > { %v1741_v19 = vsel %vm1734_vm8, %v2966_v16, 0.0 }
0x1267   : > { %1742 = vadd.xlane.f32.xlu1 %v1741_v19 }
0x12f4   : > { %v1743_v21 = vpop.xlane.xlu1 %1742 }
0x12f5   : > { %2967 = vrcp.f32 %v1743_v21 }
0x12ff   : > { %v2968_v22 = vpop.eup %2967 }
0x1300   : > { %v1745_v23 = vmul.f32 %v2968_v22, %v2966_v16 }
0x1302   : > { %v1746_v4 = vpack.c.bf16 %v1745_v23, %v1745_v23 }
0x1304   : > { %2745 = vmatmul.mubr.msk.bf16.vlgmr.msra.gmra.mrb[28].mxu0 %vm345_vm1, %v1746_v4 }
0x1305   : > { %2757 = vmatpush3.bf16.xpose.msra.mxu0 %v3535_v27  ;;  %2758 = vmatprep.mubr.msk.bf16.mxu0 %vm3064_vm0, %v3063_v1 }
0x1306   : > { %2768 = vmatprep.subr.bf16.mxu0 %v3063_v1 }
0x13d7   : > { %v1784_v6 = vpop.f32.mrb[28].mxu0 }
0x13d8   : > { %1795 = vrot.lane.b32.xlu1 %v1784_v6, %s3069_s13  ;;  %v2746_v26 = vpop.f32.mrb[29].mxu0 }
0x13d9   : > { %v1787_v34 = vpop.f32.mrb[30].mxu0 }
0x13da   : > { %v2747_v35 = vpop.f32.mrb[31].mxu0 }
0x144a   : > { %v1796_v37 = vpop.permute.xlu1 %1795 }
0x144b   : > { %v1798_v38 = vsel %vm345_vm1, %v1792_v36, %v1796_v37 }
0x144c   : > { %v1799_v40 = vpack.c.bf16 %v1798_v38, %v1798_v38 }
0x144e   : > { %2753 = vmatmul.mubr.msk.bf16.vlgmr.msra.gmra.mrb[32].mxu1 %vm703_vm11, %v1799_v40 }
0x144f   : > { %2763 = vmatpush3.bf16.msra.mxu1 %v3530_v0  ;;  %2764 = vmatprep.mubr.msk.bf16.mxu1 %vm3064_vm0, %v3063_v1 }
0x1450   : > { %2776 = vmatprep.subr.bf16.mxu1 %v3063_v1 }
0x1521   : > { %v1837_v41 = vpop.f32.mrb[32].mxu1 }
0x1522   : > { %v1838_v43 = vadd.f32 %v1837_v41, %v3490_v33  ;;  %v2754_v20 = vpop.f32.mrb[33].mxu1 }
0x1523   : > { %v1840_v44 = vpop.f32.mrb[34].mxu1 }
0x1524   : > { %2969 = vtanh.f32 %v1838_v43  ;;  %v2755_v3 = vpop.f32.mrb[35].mxu1  ;;  %v2520_v51 = vmul.f32 -1.442695, %v1838_v43 }
0x1526   : > { %2971 = vpow2.f32 %v2520_v51 }
0x152e   : > { %v2970_v48 = vpop.eup %2969 }
0x152f   : > { %1852 = vrot.lane.b32.xlu0 %v2970_v48, %s3067_s20 }
0x1530   : > { %v2972_v49 = vpop.eup %2971 }
0x1531   : > { %v1846_v52 = vadd.f32 1.0, %v2972_v49 }
0x1533   : > { %2973 = vrcp.f32 %v1846_v52 }
0x153d   : > { %v2974_v53 = vpop.eup %2973 }
0x153e   : > { %v1850_v56 = vmul.f32 %v2974_v53, %v3513_v15 }
0x15a1   : > { %v1853_v54 = vpop.permute.xlu0 %1852 }
0x15a2   : > { %v1855_v55 = vmul.f32 %v2974_v53, %v1853_v54 }
0x15a4   : > { %1857 = vrot.lane.b32.xlu0 %v1855_v55, %s3069_s13 }
0x1616   : > { %v1858_v57 = vpop.permute.xlu0 %1857 }
0x1617   : > { %v3577_v58 = vadd.f32 %v1858_v57, %v1850_v56 }
0x1619   : > { %2975 = vtanh.f32 %v3577_v58 }
0x1623   : > { %v2976_v59 = vpop.eup %2975 }
0x1624   : > { %1863 = vrot.lane.b32.xlu0 %v2976_v59, %s3070_s23 }
0x1696   : > { %v1864_v60 = vpop.permute.xlu0 %1863 }
0x1697   : > { %v1866_v61 = vmul.f32 %v2974_v53, %v1864_v60 }
0x1699   : > { %v1867_v13 = vpack.c.bf16 %v1866_v61, %v1866_v61 }
0x169b   : > { %1869 = vrot.lane.b32.xlu1 %v1867_v13, %s3071_s29 }
0x170d   : > { %v1870_v45 = vpop.permute.xlu1 %1869 }
0x170e   : > { %2759 = vmatmul.mubr.msk.bf16.vlgmr.msra.gmra.mrb[32].mxu0 %vm345_vm1, %v1870_v45 }
0x170f   : > { %2769 = vmatpush3.bf16.msra.mxu0 %v3450_v17  ;;  %2772 = vmatprep.mubr.msk.bf16.mxu0 %vm3064_vm0, %v3063_v1 }
0x1710   : > { %2770 = vmatprep.subr.bf16.mxu0 %v3063_v1 }
0x1713   : > { %2771 = vmatpush3.bf16.msra.mxu0 %v3456_v18 }
0x1714   : > { %2782 = vmatprep.subr.bf16.mxu0 %v3063_v1 }
0x17e1   : > { %v1908_v15 = vpop.f32.mrb[32].mxu0 }
0x17e2   : > { %v1914_v2 = vsel %vm3552_vm7, %v1908_v15, -1e+30  ;;  %v2760_v63 = vpop.f32.mrb[33].mxu0 }
0x17e3   : > { %v1911_v28 = vpop.f32.mrb[34].mxu0  ;;  %v1915_v31 = vsel %vm1734_vm8, %v1914_v2, -inf  ;;  %v2892_v63 = vld [vmem:[%s3716_s3 + $0x48] sm:$0xff]  }
0x17e4   : > { %1916 = vmax.xlane.f32.xlu0 %v1915_v31  ;;  %v2761_v5 = vpop.f32.mrb[35].mxu0  ;;  %v2893_v28 = vld [vmem:[%s3716_s3 + $0x50] sm:$0xff]  }
0x17fa   : > { %1971 = vrot.lane.b32.xlu0 %v1866_v61, %s3071_s29 }
0x1871   : > { %v1917_v17 = vpop.xlane.xlu0 %1916 }
0x1872   : > { %v1918_v29 = vsub.f32 %v1914_v2, %v1917_v17 }
0x1874   : > { %v1919_v32 = vmul.f32 1.442695, %v1918_v29 }
0x1875   : > { %v1972_v19 = vpop.permute.xlu0 %1971 }
0x1876   : > { %2977 = vpow2.f32 %v1919_v32 }
0x1880   : > { %v2978_v39 = vpop.eup %2977 }
0x1881   : > { %v1921_v18 = vsel %vm1734_vm8, %v2978_v39, 0.0 }
0x1882   : > { %1922 = vadd.xlane.f32.xlu1 %v1921_v18 }
0x190f   : > { %v1923_v9 = vpop.xlane.xlu1 %1922 }
0x1910   : > { %2979 = vrcp.f32 %v1923_v9 }
0x191a   : > { %v2980_v42 = vpop.eup %2979 }
0x191b   : > { %v1925_v7 = vmul.f32 %v2980_v42, %v2978_v39  ;;  %v2167_v42 = vrot.slane %v3484_v24, %v1094_v10  ;;  %v2895_v10 = vld [vmem:[%s3716_s3 + $0x60] sm:$0xff]  }
0x191d   : > { %v1926_v11 = vpack.c.bf16 %v1925_v7, %v1925_v7 }
0x191f   : > { %2765 = vmatmul.mubr.msk.bf16.vlgmr.msra.gmra.mrb[36].mxu1 %vm345_vm1, %v1926_v11 }
0x1920   : > { %2777 = vmatpush3.bf16.xpose.msra.mxu1 %v3535_v27  ;;  %2778 = vmatprep.mubr.msk.bf16.mxu1 %vm3064_vm0, %v3063_v1 }
0x1921   : > { %2788 = vmatprep.subr.bf16.mxu1 %v3063_v1 }
0x19f2   : > { %v1964_v14 = vpop.f32.mrb[36].mxu1 }
0x19f3   : > { %1975 = vrot.lane.b32.xlu1 %v1964_v14, %s3069_s13  ;;  %v2766_v8 = vpop.f32.mrb[37].mxu1 }
0x19f4   : > { %v1967_v50 = vpop.f32.mrb[38].mxu1 }
0x19f5   : > { %v2767_v16 = vpop.f32.mrb[39].mxu1 }
0x1a65   : > { %v1976_v21 = vpop.permute.xlu1 %1975 }
0x1a66   : > { %v1978_v22 = vsel %vm345_vm1, %v1972_v19, %v1976_v21 }
0x1a67   : > { %v1979_v23 = vpack.c.bf16 %v1978_v22, %v1978_v22 }
0x1a69   : > { %2773 = vmatmul.mubr.msk.bf16.vlgmr.msra.gmra.mrb[36].mxu0 %vm703_vm11, %v1979_v23 }
0x1a6a   : > { %2783 = vmatpush3.bf16.msra.mxu0 %v3530_v0  ;;  %2784 = vmatprep.mubr.msk.bf16.mxu0 %vm3064_vm0, %v3063_v1 }
0x1a6b   : > { %2796 = vmatprep.subr.bf16.mxu0 %v3063_v1 }
0x1b3c   : > { %v2017_v27 = vpop.f32.mrb[36].mxu0 }
0x1b3d   : > { %v2018_v4 = vadd.f32 %v2017_v27, %v3490_v33  ;;  %v2774_v6 = vpop.f32.mrb[37].mxu0 }
0x1b3e   : > { %v2020_v26 = vpop.f32.mrb[38].mxu0  ;;  %v2894_v6 = vld [vmem:[%s3716_s3 + $0x58] sm:$0xff]  }
0x1b3f   : > { %2981 = vtanh.f32 %v2018_v4  ;;  %v2775_v34 = vpop.f32.mrb[39].mxu0  ;;  %v2524_v36 = vmul.f32 -1.442695, %v2018_v4 }
0x1b41   : > { %2983 = vpow2.f32 %v2524_v36  ;;  %v2241_v36 = vrot.slane %v3484_v24, %v1126_v46  ;;  %v2256_v46 = vrot.slane %v3484_v24, %v1544_v62 }
0x1b49   : > { %v2982_v35 = vpop.eup %2981 }
0x1b4a   : > { %2032 = vrot.lane.b32.xlu0 %v2982_v35, %s3067_s20 }
0x1b4b   : > { %v2984_v37 = vpop.eup %2983 }
0x1b4c   : > { %v2026_v38 = vadd.f32 1.0, %v2984_v37 }
0x1b4e   : > { %2985 = vrcp.f32 %v2026_v38 }
0x1b58   : > { %v2986_v0 = vpop.eup %2985 }
0x1b59   : > { %v2030_v43 = vmul.f32 %v2986_v0, %v3577_v58 }
0x1bbc   : > { %v2033_v40 = vpop.permute.xlu0 %2032 }
0x1bbd   : > { %v2035_v41 = vmul.f32 %v2986_v0, %v2033_v40 }
0x1bbf   : > { %2037 = vrot.lane.b32.xlu1 %v2035_v41, %s3069_s13 }
0x1c31   : > { %v2038_v33 = vpop.permute.xlu1 %2037 }
0x1c32   : > { %v2040_v20 = vadd.f32 %v2038_v33, %v2030_v43 }
0x1c34   : > { %2987 = vtanh.f32 %v2040_v20 }
0x1c3e   : > { %v2988_v44 = vpop.eup %2987 }
0x1c3f   : > { %2043 = vrot.lane.b32.xlu0 %v2988_v44, %s3070_s23 }
0x1cb1   : > { %v2044_v3 = vpop.permute.xlu0 %2043 }
0x1cb2   : > { %v2046_v48 = vmul.f32 %v2986_v0, %v2044_v3  ;;  %v2246_v0 = vrot.slane %v3484_v24, %v1132_v47 }
0x1cb4   : > { %v2047_v51 = vpack.c.bf16 %v2046_v48, %v2046_v48 }
0x1cb6   : > { %2049 = vrot.lane.b32.xlu1 %v2047_v51, %s3071_s29 }
0x1d28   : > { %v2050_v49 = vpop.permute.xlu1 %2049 }
0x1d29   : > { %2779 = vmatmul.mubr.msk.bf16.vlgmr.msra.gmra.mrb[40].mxu1 %vm345_vm1, %v2050_v49  ;;  %v2319_v49 = vrot.slane %v3484_v24, %v1577_v12 }
0x1d2a   : > { %2792 = vmatprep.mubr.msk.bf16.mxu1 %vm3064_vm0, %v3063_v1  ;;  %2789 = vmatpush3.bf16.msra.mxu1 %v2892_v63 }
0x1d2b   : > { %2790 = vmatprep.subr.bf16.mxu1 %v3063_v1 }
0x1d2e   : > { %2791 = vmatpush3.bf16.msra.mxu1 %v2893_v28 }
0x1d2f   : > { %2804 = vmatprep.subr.bf16.mxu1 %v3063_v1 }
0x1dfc   : > { %v2088_v52 = vpop.f32.mrb[40].mxu1 }
0x1dfd   : > { %v2094_v53 = vsel %vm3552_vm7, %v2088_v52, -1e+30  ;;  %v2780_v54 = vpop.f32.mrb[41].mxu1 }
0x1dfe   : > { %v2091_v55 = vpop.f32.mrb[42].mxu1  ;;  %v2095_v56 = vsel %vm1734_vm8, %v2094_v53, -inf }
0x1dff   : > { %2096 = vmax.xlane.f32.xlu0 %v2095_v56  ;;  %v2781_v57 = vpop.f32.mrb[43].mxu1 }
0x1e15   : > { %2151 = vrot.lane.b32.xlu0 %v2046_v48, %s3071_s29  ;;  %s295_s29 = sand.u32 1, %s3053_s25  }
0x1e16   : > { %s2481_s8 = sshll.u32 %s295_s29, 1  ;;  %s2384_s18 = scalar_lea.sflag [#allocation3], %s295_s29 }
0x1e17   : > { %s297_s14 = scalar_lea.vmem [#allocation2], %s2481_s8 }
0x1e18   : > { %s2397_s17 = sshll.u32 %s297_s14, 4  ;;  %s3672_s17 = int_to_ptr.vmem [resolvable:$true] %s2397_s17 }
0x1e19   : > { %s2999_s19 = scalar_lea.vmem %s3672_s17, 32  ;;  %p3006_p0 = scmp.lt.s32.totalorder %s3672_s17, %s3004_s21 }
0x1e1a   : > { %p3000_p11 = scmp.ne.s32.totalorder %s3672_s17, %s2999_s19  ;;  %p3007_p1 = scmp.lt.s32.totalorder %s3005_s22, %s2999_s19 }
0x1e1c   : > { %p3001_p12 = pnand %p3000_p11, %p3151_p5  ;;  %p3008_p2 = por %p3007_p1, %p3006_p0 }
0x1e1e   : > { %p3002_p13 = pneg %p3001_p12 }
0x1e20   : > { %p3009_p3 = pnand %p3008_p2, %p3002_p13 }
0x1e8c   : > { %v2097_v58 = vpop.xlane.xlu0 %2096 }
0x1e8d   : > { %v2098_v59 = vsub.f32 %v2094_v53, %v2097_v58 }
0x1e8f   : > { %v2099_v60 = vmul.f32 1.442695, %v2098_v59 }
0x1e90   : > { %v2152_v32 = vpop.permute.xlu0 %2151 }
0x1e91   : > { %2989 = vpow2.f32 %v2099_v60 }
0x1e9b   : > { %v2990_v61 = vpop.eup %2989 }
0x1e9c   : > { %v2101_v13 = vsel %vm1734_vm8, %v2990_v61, 0.0 }
0x1e9d   : > { %2102 = vadd.xlane.f32.xlu1 %v2101_v13 }
0x1f2a   : > { %v2103_v45 = vpop.xlane.xlu1 %2102 }
0x1f2b   : > { %2991 = vrcp.f32 %v2103_v45 }
0x1f35   : > { %v2992_v30 = vpop.eup %2991 }
0x1f36   : > { %v2105_v15 = vmul.f32 %v2992_v30, %v2990_v61 }
0x1f38   : > { %v2106_v2 = vpack.c.bf16 %v2105_v15, %v2105_v15 }
0x1f3a   : > { %2785 = vmatmul.mubr.msk.bf16.vlgmr.msra.gmra.mrb[40].mxu0 %vm345_vm1, %v2106_v2 }
0x1f3b   : > { %2800 = vmatprep.mubr.msk.bf16.mxu0 %vm3064_vm0, %v3063_v1  ;;  %2797 = vmatpush3.bf16.msra.mxu0 %v2894_v6 }
0x1f3c   : > { %2798 = vmatprep.subr.bf16.mxu0 %v3063_v1 }
0x1f3f   : > { %2799 = vmatpush3.bf16.msra.mxu0 %v2895_v10 }
0x200d   : > { %v2144_v31 = vpop.f32.mrb[40].mxu0 }
0x200e   : > { %2155 = vrot.lane.b32.xlu1 %v2144_v31, %s3069_s13  ;;  %v2786_v5 = vpop.f32.mrb[41].mxu0 }
0x200f   : > { %v2147_v17 = vpop.f32.mrb[42].mxu0 }
0x2010   : > { %v2787_v29 = vpop.f32.mrb[43].mxu0 }
0x2080   : > { %v2156_v39 = vpop.permute.xlu1 %2155 }
0x2081   : > { %v2158_v18 = vsel %vm345_vm1, %v2152_v32, %v2156_v39 }
0x2082   : > { %v2159_v9 = vpack.c.bf16 %v2158_v18, %v2158_v18 }
0x2084   : > { %2793 = vmatmul.mubr.msk.bf16.vlgmr.msra.gmra.mrb[44].mxu1 %vm703_vm11, %v2159_v9 }
0x2085   : > { %2806 = vmatprep.mubr.msk.bf16.mxu1 %vm3064_vm0, %v3063_v1  ;;  %v2896_v1 = vld [vmem:[%s3716_s3 + $0x68] sm:$0xff]   ;;  %vm2369_vm0 = vcmask 33792  }
0x2086   : > { %2805 = vmatpush3.bf16.msra.mxu1 %v2896_v1 }
0x2157   : > { %v2217_v7 = vpop.f32.mrb[44].mxu1 }
0x2158   : > { %v2218_v11 = vadd.f32 %v2217_v7, %v2167_v42  ;;  %v2794_v14 = vpop.f32.mrb[45].mxu1 }
0x2159   : > { %v2220_v8 = vpop.f32.mrb[46].mxu1 }
0x215a   : > { %v2223_v50 = vmax.f32 %v2218_v11, 0.0  ;;  %v2795_v16 = vpop.f32.mrb[47].mxu1 }
0x215c   : > { %v2225_v19 = vsel %vm2224_vm9, %v2223_v50, 0.0 }
0x215d   : > { %2226 = vadd.xlane.f32.xlu0 %v2225_v19 }
0x21ea   : > { %v2227_v21 = vpop.xlane.xlu0 %2226 }
0x21eb   : > { %v2228_v22 = vmul.f32 0.03125, %v2227_v21 }
0x21ed   : > { %v2229_v23 = vsub.f32 %v2223_v50, %v2228_v22 }
0x21ef   : > { %v2230_v27 = vmul.f32 %v2229_v23, %v2229_v23 }
0x21f1   : > { %v2231_v4 = vsel %vm2224_vm9, %v2230_v27, 0.0 }
0x21f2   : > { %2232 = vadd.xlane.f32.xlu1 %v2231_v4 }
0x227f   : > { %v2233_v26 = vpop.xlane.xlu1 %2232 }
0x2280   : > { %v2234_v34 = vmul.f32 0.03125, %v2233_v26 }
0x2282   : > { %v2235_v35 = vadd.f32 1e-05, %v2234_v34 }
0x2284   : > { %2993 = vrsqrt.f32 %v2235_v35 }
0x228e   : > { %v2994_v37 = vpop.eup %2993 }
0x228f   : > { %v2237_v38 = vmul.f32 %v2994_v37, %v2229_v23 }
0x2291   : > { %v2242_v40 = vmul.f32 %v2241_v36, %v2237_v38 }
0x2293   : > { %v2247_v41 = vadd.f32 %v2246_v0, %v2242_v40 }
0x2295   : > { %v2248_v43 = vpack.c.bf16 %v2247_v41, %v2247_v41 }
0x2297   : > { %2801 = vmatmul.mubr.msk.bf16.vlgmr.msra.gmra.mrb[44].mxu0 %vm703_vm11, %v2248_v43 }
0x236a   : > { %v2306_v33 = vpop.f32.mrb[44].mxu0 }
0x236b   : > { %v2307_v20 = vadd.f32 %v2306_v33, %v2256_v46  ;;  %v2802_v44 = vpop.f32.mrb[45].mxu0 }
0x236c   : > { %v2309_v3 = vpop.f32.mrb[46].mxu0 }
0x236d   : > { %v2312_v48 = vmax.f32 %v2307_v20, 0.0  ;;  %v2803_v47 = vpop.f32.mrb[47].mxu0 }
0x236f   : > { %v2313_v51 = vpack.c.bf16 %v2312_v48, %v2312_v48 }
0x2371   : > { %2807 = vmatmul.mubr.msk.bf16.vlgmr.msra.gmra.mrb[48].mxu1 %vm345_vm1, %v2313_v51 }
0x2444   : > { %v2363_v52 = vpop.f32.mrb[48].mxu1 }
0x2445   : > { %v2364_v53 = vadd.f32 %v2363_v52, %v2319_v49  ;;  %v2808_v54 = vpop.f32.mrb[49].mxu1 }
0x2446   : > { %v2366_v55 = vpop.f32.mrb[50].mxu1 }
0x2447   : > { %v2809_v62 = vpop.f32.mrb[51].mxu1  ;;  %v2370_v56 = vsel %vm2369_vm0, %v2364_v53, -inf }
0x2448   : > { %2371 = vmax.xlane.f32.xlu0 %v2370_v56 }
0x24d5   : > { %v2372_v57 = vpop.xlane.xlu0 %2371 }
0x24d6   : > { %v2373_v58 = vsub.f32 %v2364_v53, %v2372_v57 }
0x24d8   : > { %v2374_v59 = vmul.f32 1.442695, %v2373_v58 }
0x24da   : > { %2995 = vpow2.f32 %v2374_v59 }
0x24e4   : > { %v2996_v60 = vpop.eup %2995 }
0x24e5   : > { %v2376_v25 = vsel %vm2369_vm0, %v2996_v60, 0.0 }
0x24e6   : > { %2377 = vadd.xlane.f32.xlu0 %v2376_v25 }
0x2573   : > { %v2378_v24 = vpop.xlane.xlu0 %2377 }
0x2574   : > { %2997 = vlog2.f32 %v2378_v24 }
0x257e   : > { %v2998_v12 = vpop.eup %2997 }
0x257f   : > { %v2380_v61 = vmul.f32 0.6931472, %v2998_v12 }
0x2581   : > { %v2381_v13 = vsub.f32 %v2373_v58, %v2380_v61 }
0x2583   : > { %2382 = vst.msk [vmem:[%s297_s14] sm:$0x3] %vm2369_vm0, %v2381_v13 }
0x2584   : > { %3012 = shalt.err (!%p3009_p3)
}
0x2585   : > { %s3013_s13 = scalar_lea.hbm %s3670_s16, 32  ;;  %s3017_s8 = scalar_lea.hbm %s3720_s7, 128 }
0x2586   : > { %p3014_p4 = scmp.ne.s32.totalorder %s3670_s16, %s3013_s13  ;;  %p3018_p9 = scmp.lt.u32.totalorder %s3670_s16, %s3720_s7 }
0x2587   : > { %p3019_p10 = scmp.lt.u32.totalorder %s3017_s8, %s3013_s13  ;;  %p3021_p12 = scmp.lt.u32.totalorder %s3013_s13, %s3670_s16 }
0x2588   : > { %p3015_p7 = pnand %p3014_p4, %p3151_p5 }
0x2589   : > { %p3020_p11 = por %p3019_p10, %p3018_p9 }
0x258a   : > { %p3016_p8 = pneg %p3015_p7 }
0x258b   : > { %p3022_p13 = por %p3021_p12, %p3020_p11 }
0x258d   : > { %p3023_p0 = pnand %p3022_p13, %p3016_p8 }
0x258f   : > { %3026 = shalt.err (!%p3023_p0)
}
0x2590   : > { %2822 = dma.vmem_to_hbm [thread:$0]  (%p3151_p5), %s3672_s17, 32, %s3670_s16, %s2384_s18  }
0x2591 PF: > { %p2828_p1 = scmp.ge.s32.totalorder %s3061_s27, 2  ;;  %s2409_s20 = sand.u32 1, %s3049_s24  }
0x2592   : > { %s2410_s15 = scalar_lea.sflag [#allocation3], %s2409_s20 }
0x2593   : > { %p2825_p2 = pnand %p2828_p1, %p3155_p6 }
0x2595   : > { %3044 = dma.done.wait (!%p2825_p2), %s2410_s15, 32  }
0x2596   : > { %3046 = vsyncadd (!%p2825_p2), %s2410_s15, 4294967264  ;;  %p17_p3 = scmp.ge.s32.totalorder %s3138_s30, 6   ;;  %s3729_s24 = smov %s3053_s25 }
0x2597   : > { %s3730_s25 = smov %s3057_s26  ;;  %s3731_s26 = smov %s3149_s10 }
0x2598   : > { %s3732_s27 = smov %s3138_s30  ;;  %19 = sbr.rel (!%p17_p3) target bundleno = 3 (0x3), region = 89 }
0x259f   :  { %2415 = vsyncpa [#allocation3], 1 }
0x25a0   :  { %2417 = vsyncpa [#allocation3 + $0x1], 1 }

</bundles_post_ra>
